<compile_context>
chip_gen: v7x
topology: tpu7x:2x2x1
jax: 0.10.0
libtpu: 0.0.40
codegen_flags: <defaults>
</compile_context>

<pallas_src>
import jax
import jax.numpy as jnp
from jax import lax
from jax.experimental import pallas as pl
from jax.experimental.pallas import tpu as pltpu


# --------------------------- in-kernel helpers ------------------------------

def _tap(x3, off, axis, fill):
    """y[..., i, ...] = x3[..., i + off, ...] along `axis`; out-of-range -> fill."""
    if off == 0:
        return x3
    shape = list(x3.shape)
    shape[axis] = 1
    slab = jnp.full(shape, fill, x3.dtype)
    n = x3.shape[axis]
    if off < 0:
        core = lax.slice_in_dim(x3, 0, n - 1, axis=axis)
        return jnp.concatenate([slab, core], axis=axis)
    core = lax.slice_in_dim(x3, 1, n, axis=axis)
    return jnp.concatenate([core, slab], axis=axis)


def _conv1x1_relu(x2, w, b):
    # x2: (M, Cin), w: (Cin, Cout), b: (1, Cout) -- conv bias + BN already folded.
    acc = jnp.dot(x2, w, preferred_element_type=jnp.float32)
    return jnp.maximum(acc + b, 0.0)


def _conv3_relu(x3, w_cat, b, axis):
    # x3: (H, W, Cin); w_cat: (3*Cin, Cout), tap-major / channel-minor.
    # 3-tap correlation along `axis` (axis=1 -> kernel [1,3], axis=0 -> [3,1]),
    # stride 1, padding 1.  The three shifted views are lane-concatenated so
    # the whole conv is a SINGLE MXU matmul with K = 3*Cin.
    H, W, Cin = x3.shape
    taps = jnp.concatenate([_tap(x3, j - 1, axis, 0.0) for j in range(3)], axis=-1)
    acc = jnp.dot(taps.reshape(H * W, 3 * Cin), w_cat,
                  preferred_element_type=jnp.float32)
    return jnp.maximum(acc + b, 0.0).reshape(H, W, -1)


def _maxpool3x3(x3):
    # 3x3 max pool, stride 1, padding 1 (padding acts as -inf, matching PyTorch).
    acc = None
    for dh in (-1, 0, 1):
        xh = _tap(x3, dh, 0, -jnp.inf)
        for dw in (-1, 0, 1):
            v = _tap(xh, dw, 1, -jnp.inf)
            acc = v if acc is None else jnp.maximum(acc, v)
    return acc


def _sigmoid(z):
    return 1.0 / (1.0 + jnp.exp(-z))


# ------------------------------ fused kernel --------------------------------

def _make_kernel(splits):
    c1, c2r, c3r = splits  # lane widths of the fused-stem outputs (static ints)

    def kernel(x_ref,
               w_stem, b_stem,
               w_b2_1, b_b2_1, w_b2_2, b_b2_2,
               w_b3_1, b_b3_1, w_b3_2, b_b3_2,
               w_b3_3, b_b3_3, w_b3_4, b_b3_4,
               w_b4, b_b4,
               se_w1, se_w2,
               o_ref):
        x = x_ref[0]                               # (H, W, Cin) for this batch element
        H, W, Cin = x.shape
        x2 = x.reshape(H * W, Cin)

        # fused stem: [branch1 1x1 | branch2 reduce 1x1 | branch3 reduce 1x1]
        stem = _conv1x1_relu(x2, w_stem[...], b_stem[...])          # (H*W, c1+c2r+c3r)
        br1 = stem[:, :c1].reshape(H, W, c1)
        t2 = stem[:, c1:c1 + c2r].reshape(H, W, c2r)
        t3 = stem[:, c1 + c2r:c1 + c2r + c3r].reshape(H, W, c3r)

        # branch 2: (1x1 done above) -> 1x3 -> 3x1
        t2 = _conv3_relu(t2, w_b2_1[...], b_b2_1[...], axis=1)
        br2 = _conv3_relu(t2, w_b2_2[...], b_b2_2[...], axis=0)

        # branch 3: (1x1 done above) -> 1x3 -> 3x1 -> 1x3 -> 3x1
        t3 = _conv3_relu(t3, w_b3_1[...], b_b3_1[...], axis=1)
        t3 = _conv3_relu(t3, w_b3_2[...], b_b3_2[...], axis=0)
        t3 = _conv3_relu(t3, w_b3_3[...], b_b3_3[...], axis=1)
        br3 = _conv3_relu(t3, w_b3_4[...], b_b3_4[...], axis=0)

        # branch 4: maxpool(3, stride 1, pad 1) -> 1x1
        xp = _maxpool3x3(x).reshape(H * W, Cin)
        br4 = _conv1x1_relu(xp, w_b4[...], b_b4[...]).reshape(H, W, -1)

        # channel concat (lane-dense: Ctotal = 128 lanes) + SE epilogue
        cat = jnp.concatenate([br1, br2, br3, br4], axis=-1)         # (H, W, Ct)
        Ct = cat.shape[-1]
        y = jnp.mean(cat.reshape(H * W, Ct), axis=0, keepdims=True)  # (1, Ct)
        h1 = jnp.maximum(
            jnp.dot(y, se_w1[...], preferred_element_type=jnp.float32), 0.0)
        s = _sigmoid(jnp.dot(h1, se_w2[...], preferred_element_type=jnp.float32))
        o_ref[...] = (cat * s.reshape(1, 1, Ct)).reshape(o_ref.shape)

    return kernel


# --------------------------- host-side folding ------------------------------

_BN_EPS = 1e-5


def _fold_conv(p):
    """Fold conv bias + BatchNorm (eval mode) into (weight_matrix, bias_row).

    1x1  -> (Cin, Cout)
    1x3 / 3x1 -> (3*Cin, Cout), tap-major / channel-minor (matches the
    in-kernel lane-concatenated taps).
    """
    w, b = p["w"], p["b"]
    scale = p["gamma"] / jnp.sqrt(p["var"] + _BN_EPS)
    bias = (b - p["mean"]) * scale + p["beta"]
    cout, cin, kh, kw = w.shape                     # static shape -> static branching
    if (kh, kw) == (1, 1):
        wm = jnp.transpose(w[:, :, 0, 0], (1, 0)) * scale[None, :]
    elif (kh, kw) == (1, 3):
        wm = (jnp.transpose(w[:, :, 0, :], (2, 1, 0))
              * scale[None, None, :]).reshape(3 * cin, cout)
    elif (kh, kw) == (3, 1):
        wm = (jnp.transpose(w[:, :, :, 0], (2, 1, 0))
              * scale[None, None, :]).reshape(3 * cin, cout)
    else:
        raise ValueError(f"unsupported kernel size {(kh, kw)}")
    return wm, bias.reshape(1, cout)


def inception_v3b_forward(x_nchw, params):
    x = jnp.transpose(x_nchw, (0, 2, 3, 1)).astype(jnp.float32)      # NCHW -> NHWC
    N, H, W, Cin = x.shape

    # Fuse the three 1x1 convs that consume the raw input into one matmul.
    w1, b1 = _fold_conv(params["b1"])
    w2, b2 = _fold_conv(params["b2_0"])
    w3, b3 = _fold_conv(params["b3_0"])
    w_stem = jnp.concatenate([w1, w2, w3], axis=1)                    # (Cin, c1+c2r+c3r)
    b_stem = jnp.concatenate([b1, b2, b3], axis=1)
    splits = (w1.shape[1], w2.shape[1], w3.shape[1])                  # static ints

    weight_args = [w_stem, b_stem]
    for name in ("b2_1", "b2_2", "b3_1", "b3_2", "b3_3", "b3_4", "b4"):
        wm, bm = _fold_conv(params[name])
        weight_args += [wm, bm]
    weight_args += [params["se_w1"], params["se_w2"]]
    Ct = params["se_w1"].shape[0]

    def _bcast_spec(a):
        nd = a.ndim
        return pl.BlockSpec(a.shape, lambda n, _nd=nd: (0,) * _nd)

    out_nhwc = pl.pallas_call(
        _make_kernel(splits),
        out_shape=jax.ShapeDtypeStruct((N, H, W, Ct), jnp.float32),
        grid_spec=pltpu.PrefetchScalarGridSpec(
            num_scalar_prefetch=0,
            grid=(N,),
            in_specs=[pl.BlockSpec((1, H, W, Cin), lambda n: (n, 0, 0, 0))]
                     + [_bcast_spec(a) for a in weight_args],
            out_specs=pl.BlockSpec((1, H, W, Ct), lambda n: (n, 0, 0, 0)),
        ),
        compiler_params=pltpu.CompilerParams(
            dimension_semantics=("parallel",),
        ),
    )(x, *weight_args)

    return jnp.transpose(out_nhwc, (0, 3, 1, 2))                      # NHWC -> NCHW


# ----------------------------- parameter init -------------------------------

def init_basic_conv(key, cin, cout, kh, kw):
    ks = jax.random.split(key, 6)
    return dict(
        w=jax.random.normal(ks[0], (cout, cin, kh, kw), jnp.float32) * 0.1,
        b=jax.random.normal(ks[1], (cout,), jnp.float32) * 0.05,
        gamma=1.0 + 0.1 * jax.random.normal(ks[2], (cout,), jnp.float32),
        beta=0.05 * jax.random.normal(ks[3], (cout,), jnp.float32),
        mean=0.05 * jax.random.normal(ks[4], (cout,), jnp.float32),
        var=0.5 + 0.5 * jnp.abs(jax.random.normal(ks[5], (cout,), jnp.float32)),
    )


def init_inception_v3b(key, in_channels, ch1x1, ch3x3red, ch3x3,
                       ch3x3redX2, ch3x3X2, pool_proj, ratio=16):
    keys = jax.random.split(key, 12)
    params = {
        "b1": init_basic_conv(keys[0], in_channels, ch1x1, 1, 1),
        "b2_0": init_basic_conv(keys[1], in_channels, ch3x3red, 1, 1),
        "b2_1": init_basic_conv(keys[2], ch3x3red, ch3x3, 1, 3),
        "b2_2": init_basic_conv(keys[3], ch3x3, ch3x3, 3, 1),
        "b3_0": init_basic_conv(keys[4], in_channels, ch3x3redX2, 1, 1),
        "b3_1": init_basic_conv(keys[5], ch3x3redX2, ch3x3X2, 1, 3),
        "b3_2": init_basic_conv(keys[6], ch3x3X2, ch3x3X2, 3, 1),
        "b3_3": init_basic_conv(keys[7], ch3x3X2, ch3x3X2, 1, 3),
        "b3_4": init_basic_conv(keys[8], ch3x3X2, ch3x3X2, 3, 1),
        "b4": init_basic_conv(keys[9], in_channels, pool_proj, 1, 1),
    }
    total = ch1x1 + ch3x3 + ch3x3X2 + pool_proj
    hidden = total // ratio
    # nn.Linear(bias=False) weights, stored pre-transposed as (in, out).
    params["se_w1"] = jax.random.normal(keys[10], (total, hidden), jnp.float32) * 0.1
    params["se_w2"] = jax.random.normal(keys[11], (hidden, total), jnp.float32) * 0.1
    return params


# ----------------------------------- main ------------------------------------

if __name__ == "__main__":
    key = jax.random.PRNGKey(0)
    k_x, k_p = jax.random.split(key)

    # small shapes: batch=2, in_channels=16, spatial=8x8
    N, Cin, H, W = 2, 16, 8, 8
    x = jax.random.normal(k_x, (N, Cin, H, W), jnp.float32)

    # ch1x1=32, ch3x3red=16, ch3x3=32, ch3x3redX2=16, ch3x3X2=32, pool_proj=32
    # -> total concat channels = 128, SE hidden = 128 // 16 = 8
    params = init_inception_v3b(k_p, Cin, 32, 16, 32, 16, 32, 32)

    fwd = jax.jit(inception_v3b_forward)
    out = fwd(x, params)
    jax.block_until_ready(out)

    expected_shape = (N, 32 + 32 + 32 + 32, H, W)
    assert out.shape == expected_shape, (out.shape, expected_shape)
    assert bool(jnp.all(jnp.isfinite(out)))
    print("KERNEL_OK")
</pallas_src>

<mosaic_0001>
module attributes {stable_mosaic.version = 11 : i64} {
  func.func @kernel(%arg0: i32, %arg1: memref<1x8x8x16xf32, #tpu.memory_space<vmem>>, %arg2: memref<16x64xf32, #tpu.memory_space<vmem>>, %arg3: memref<1x64xf32, #tpu.memory_space<vmem>>, %arg4: memref<48x32xf32, #tpu.memory_space<vmem>>, %arg5: memref<1x32xf32, #tpu.memory_space<vmem>>, %arg6: memref<96x32xf32, #tpu.memory_space<vmem>>, %arg7: memref<1x32xf32, #tpu.memory_space<vmem>>, %arg8: memref<48x32xf32, #tpu.memory_space<vmem>>, %arg9: memref<1x32xf32, #tpu.memory_space<vmem>>, %arg10: memref<96x32xf32, #tpu.memory_space<vmem>>, %arg11: memref<1x32xf32, #tpu.memory_space<vmem>>, %arg12: memref<96x32xf32, #tpu.memory_space<vmem>>, %arg13: memref<1x32xf32, #tpu.memory_space<vmem>>, %arg14: memref<96x32xf32, #tpu.memory_space<vmem>>, %arg15: memref<1x32xf32, #tpu.memory_space<vmem>>, %arg16: memref<16x32xf32, #tpu.memory_space<vmem>>, %arg17: memref<1x32xf32, #tpu.memory_space<vmem>>, %arg18: memref<128x8xf32, #tpu.memory_space<vmem>>, %arg19: memref<8x128xf32, #tpu.memory_space<vmem>>, %arg20: memref<1x8x8x128xf32, #tpu.memory_space<vmem>>) attributes {dimension_semantics = [#tpu.dimension_semantics<parallel>], iteration_bounds = array<i64: 2>, scalar_prefetch = 0 : i64, scratch_operands = 0 : i64, tpu.core_type = #tpu.core_type<tc>, window_params = [{transform_indices = @transform_0, window_bounds = array<i64: 1, 8, 8, 16>}, {pipeline_mode = #tpu.pipeline_mode<synchronous>, transform_indices = @transform_1, window_bounds = array<i64: 16, 64>}, {pipeline_mode = #tpu.pipeline_mode<synchronous>, transform_indices = @transform_2, window_bounds = array<i64: 1, 64>}, {pipeline_mode = #tpu.pipeline_mode<synchronous>, transform_indices = @transform_3, window_bounds = array<i64: 48, 32>}, {pipeline_mode = #tpu.pipeline_mode<synchronous>, transform_indices = @transform_4, window_bounds = array<i64: 1, 32>}, {pipeline_mode = #tpu.pipeline_mode<synchronous>, transform_indices = @transform_5, window_bounds = array<i64: 96, 32>}, {pipeline_mode = #tpu.pipeline_mode<synchronous>, transform_indices = @transform_6, window_bounds = array<i64: 1, 32>}, {pipeline_mode = #tpu.pipeline_mode<synchronous>, transform_indices = @transform_7, window_bounds = array<i64: 48, 32>}, {pipeline_mode = #tpu.pipeline_mode<synchronous>, transform_indices = @transform_8, window_bounds = array<i64: 1, 32>}, {pipeline_mode = #tpu.pipeline_mode<synchronous>, transform_indices = @transform_9, window_bounds = array<i64: 96, 32>}, {pipeline_mode = #tpu.pipeline_mode<synchronous>, transform_indices = @transform_10, window_bounds = array<i64: 1, 32>}, {pipeline_mode = #tpu.pipeline_mode<synchronous>, transform_indices = @transform_11, window_bounds = array<i64: 96, 32>}, {pipeline_mode = #tpu.pipeline_mode<synchronous>, transform_indices = @transform_12, window_bounds = array<i64: 1, 32>}, {pipeline_mode = #tpu.pipeline_mode<synchronous>, transform_indices = @transform_13, window_bounds = array<i64: 96, 32>}, {pipeline_mode = #tpu.pipeline_mode<synchronous>, transform_indices = @transform_14, window_bounds = array<i64: 1, 32>}, {pipeline_mode = #tpu.pipeline_mode<synchronous>, transform_indices = @transform_15, window_bounds = array<i64: 16, 32>}, {pipeline_mode = #tpu.pipeline_mode<synchronous>, transform_indices = @transform_16, window_bounds = array<i64: 1, 32>}, {pipeline_mode = #tpu.pipeline_mode<synchronous>, transform_indices = @transform_17, window_bounds = array<i64: 128, 8>}, {pipeline_mode = #tpu.pipeline_mode<synchronous>, transform_indices = @transform_18, window_bounds = array<i64: 8, 128>}, {transform_indices = @transform_19, window_bounds = array<i64: 1, 8, 8, 128>}]} {
    %c0 = arith.constant 0 : index
    %c0_0 = arith.constant 0 : index
    %c0_1 = arith.constant 0 : index
    %c0_2 = arith.constant 0 : index
    %0 = vector.load %arg1[%c0, %c0_0, %c0_1, %c0_2] : memref<1x8x8x16xf32, #tpu.memory_space<vmem>>, vector<1x8x8x16xf32>
    %1 = vector.shape_cast %0 : vector<1x8x8x16xf32> to vector<8x8x16xf32>
    %2 = vector.shape_cast %1 : vector<8x8x16xf32> to vector<64x16xf32>
    %c0_3 = arith.constant 0 : index
    %c0_4 = arith.constant 0 : index
    %3 = vector.load %arg2[%c0_3, %c0_4] : memref<16x64xf32, #tpu.memory_space<vmem>>, vector<16x64xf32>
    %c0_5 = arith.constant 0 : index
    %c0_6 = arith.constant 0 : index
    %4 = vector.load %arg3[%c0_5, %c0_6] : memref<1x64xf32, #tpu.memory_space<vmem>>, vector<1x64xf32>
    %cst = arith.constant dense<0.000000e+00> : vector<64x64xf32>
    %5 = tpu.matmul %2, %3, %cst {dimension_numbers = #tpu.dot_dimension_numbers<[1], [0], [0], [1], [0, 0, 1, 1], [], []>} : vector<64x16xf32>, vector<16x64xf32>, vector<64x64xf32> -> vector<64x64xf32>
    %6 = vector.broadcast %4 : vector<1x64xf32> to vector<64x64xf32>
    %7 = arith.addf %5, %6 : vector<64x64xf32>
    %cst_7 = arith.constant 0.000000e+00 : f32
    %8 = vector.broadcast %cst_7 : f32 to vector<64x64xf32>
    %9 = arith.maximumf %7, %8 : vector<64x64xf32>
    %10 = vector.extract_strided_slice %9 {offsets = [0, 0], sizes = [64, 32], strides = [1, 1]} : vector<64x64xf32> to vector<64x32xf32>
    %11 = vector.shape_cast %10 : vector<64x32xf32> to vector<8x8x32xf32>
    %12 = vector.extract_strided_slice %9 {offsets = [0, 32], sizes = [64, 16], strides = [1, 1]} : vector<64x64xf32> to vector<64x16xf32>
    %13 = vector.shape_cast %12 : vector<64x16xf32> to vector<8x8x16xf32>
    %14 = vector.extract_strided_slice %9 {offsets = [0, 48], sizes = [64, 16], strides = [1, 1]} : vector<64x64xf32> to vector<64x16xf32>
    %15 = vector.shape_cast %14 : vector<64x16xf32> to vector<8x8x16xf32>
    %c0_8 = arith.constant 0 : index
    %c0_9 = arith.constant 0 : index
    %16 = vector.load %arg4[%c0_8, %c0_9] : memref<48x32xf32, #tpu.memory_space<vmem>>, vector<48x32xf32>
    %c0_10 = arith.constant 0 : index
    %c0_11 = arith.constant 0 : index
    %17 = vector.load %arg5[%c0_10, %c0_11] : memref<1x32xf32, #tpu.memory_space<vmem>>, vector<1x32xf32>
    %cst_12 = arith.constant 0.000000e+00 : f32
    %18 = vector.broadcast %cst_12 : f32 to vector<8x1x16xf32>
    %19 = vector.extract_strided_slice %13 {offsets = [0, 0, 0], sizes = [8, 7, 16], strides = [1, 1, 1]} : vector<8x8x16xf32> to vector<8x7x16xf32>
    %20 = tpu.concatenate %18, %19 in 1 : vector<8x1x16xf32>, vector<8x7x16xf32> -> vector<8x8x16xf32>
    %cst_13 = arith.constant 0.000000e+00 : f32
    %21 = vector.broadcast %cst_13 : f32 to vector<8x1x16xf32>
    %22 = vector.extract_strided_slice %13 {offsets = [0, 1, 0], sizes = [8, 7, 16], strides = [1, 1, 1]} : vector<8x8x16xf32> to vector<8x7x16xf32>
    %23 = tpu.concatenate %22, %21 in 1 : vector<8x7x16xf32>, vector<8x1x16xf32> -> vector<8x8x16xf32>
    %24 = tpu.concatenate %20, %13, %23 in 2 : vector<8x8x16xf32>, vector<8x8x16xf32>, vector<8x8x16xf32> -> vector<8x8x48xf32>
    %25 = vector.shape_cast %24 : vector<8x8x48xf32> to vector<64x48xf32>
    %cst_14 = arith.constant dense<0.000000e+00> : vector<64x32xf32>
    %26 = tpu.matmul %25, %16, %cst_14 {dimension_numbers = #tpu.dot_dimension_numbers<[1], [0], [0], [1], [0, 0, 1, 1], [], []>} : vector<64x48xf32>, vector<48x32xf32>, vector<64x32xf32> -> vector<64x32xf32>
    %27 = vector.broadcast %17 : vector<1x32xf32> to vector<64x32xf32>
    %28 = arith.addf %26, %27 : vector<64x32xf32>
    %cst_15 = arith.constant 0.000000e+00 : f32
    %29 = vector.broadcast %cst_15 : f32 to vector<64x32xf32>
    %30 = arith.maximumf %28, %29 : vector<64x32xf32>
    %31 = vector.shape_cast %30 : vector<64x32xf32> to vector<8x8x32xf32>
    %c0_16 = arith.constant 0 : index
    %c0_17 = arith.constant 0 : index
    %32 = vector.load %arg6[%c0_16, %c0_17] : memref<96x32xf32, #tpu.memory_space<vmem>>, vector<96x32xf32>
    %c0_18 = arith.constant 0 : index
    %c0_19 = arith.constant 0 : index
    %33 = vector.load %arg7[%c0_18, %c0_19] : memref<1x32xf32, #tpu.memory_space<vmem>>, vector<1x32xf32>
    %cst_20 = arith.constant 0.000000e+00 : f32
    %34 = vector.broadcast %cst_20 : f32 to vector<1x8x32xf32>
    %35 = vector.extract_strided_slice %31 {offsets = [0, 0, 0], sizes = [7, 8, 32], strides = [1, 1, 1]} : vector<8x8x32xf32> to vector<7x8x32xf32>
    %36 = tpu.concatenate %34, %35 in 0 : vector<1x8x32xf32>, vector<7x8x32xf32> -> vector<8x8x32xf32>
    %cst_21 = arith.constant 0.000000e+00 : f32
    %37 = vector.broadcast %cst_21 : f32 to vector<1x8x32xf32>
    %38 = vector.extract_strided_slice %31 {offsets = [1, 0, 0], sizes = [7, 8, 32], strides = [1, 1, 1]} : vector<8x8x32xf32> to vector<7x8x32xf32>
    %39 = tpu.concatenate %38, %37 in 0 : vector<7x8x32xf32>, vector<1x8x32xf32> -> vector<8x8x32xf32>
    %40 = tpu.concatenate %36, %31, %39 in 2 : vector<8x8x32xf32>, vector<8x8x32xf32>, vector<8x8x32xf32> -> vector<8x8x96xf32>
    %41 = vector.shape_cast %40 : vector<8x8x96xf32> to vector<64x96xf32>
    %cst_22 = arith.constant dense<0.000000e+00> : vector<64x32xf32>
    %42 = tpu.matmul %41, %32, %cst_22 {dimension_numbers = #tpu.dot_dimension_numbers<[1], [0], [0], [1], [0, 0, 1, 1], [], []>} : vector<64x96xf32>, vector<96x32xf32>, vector<64x32xf32> -> vector<64x32xf32>
    %43 = vector.broadcast %33 : vector<1x32xf32> to vector<64x32xf32>
    %44 = arith.addf %42, %43 : vector<64x32xf32>
    %cst_23 = arith.constant 0.000000e+00 : f32
    %45 = vector.broadcast %cst_23 : f32 to vector<64x32xf32>
    %46 = arith.maximumf %44, %45 : vector<64x32xf32>
    %47 = vector.shape_cast %46 : vector<64x32xf32> to vector<8x8x32xf32>
    %c0_24 = arith.constant 0 : index
    %c0_25 = arith.constant 0 : index
    %48 = vector.load %arg8[%c0_24, %c0_25] : memref<48x32xf32, #tpu.memory_space<vmem>>, vector<48x32xf32>
    %c0_26 = arith.constant 0 : index
    %c0_27 = arith.constant 0 : index
    %49 = vector.load %arg9[%c0_26, %c0_27] : memref<1x32xf32, #tpu.memory_space<vmem>>, vector<1x32xf32>
    %cst_28 = arith.constant 0.000000e+00 : f32
    %50 = vector.broadcast %cst_28 : f32 to vector<8x1x16xf32>
    %51 = vector.extract_strided_slice %15 {offsets = [0, 0, 0], sizes = [8, 7, 16], strides = [1, 1, 1]} : vector<8x8x16xf32> to vector<8x7x16xf32>
    %52 = tpu.concatenate %50, %51 in 1 : vector<8x1x16xf32>, vector<8x7x16xf32> -> vector<8x8x16xf32>
    %cst_29 = arith.constant 0.000000e+00 : f32
    %53 = vector.broadcast %cst_29 : f32 to vector<8x1x16xf32>
    %54 = vector.extract_strided_slice %15 {offsets = [0, 1, 0], sizes = [8, 7, 16], strides = [1, 1, 1]} : vector<8x8x16xf32> to vector<8x7x16xf32>
    %55 = tpu.concatenate %54, %53 in 1 : vector<8x7x16xf32>, vector<8x1x16xf32> -> vector<8x8x16xf32>
    %56 = tpu.concatenate %52, %15, %55 in 2 : vector<8x8x16xf32>, vector<8x8x16xf32>, vector<8x8x16xf32> -> vector<8x8x48xf32>
    %57 = vector.shape_cast %56 : vector<8x8x48xf32> to vector<64x48xf32>
    %cst_30 = arith.constant dense<0.000000e+00> : vector<64x32xf32>
    %58 = tpu.matmul %57, %48, %cst_30 {dimension_numbers = #tpu.dot_dimension_numbers<[1], [0], [0], [1], [0, 0, 1, 1], [], []>} : vector<64x48xf32>, vector<48x32xf32>, vector<64x32xf32> -> vector<64x32xf32>
    %59 = vector.broadcast %49 : vector<1x32xf32> to vector<64x32xf32>
    %60 = arith.addf %58, %59 : vector<64x32xf32>
    %cst_31 = arith.constant 0.000000e+00 : f32
    %61 = vector.broadcast %cst_31 : f32 to vector<64x32xf32>
    %62 = arith.maximumf %60, %61 : vector<64x32xf32>
    %63 = vector.shape_cast %62 : vector<64x32xf32> to vector<8x8x32xf32>
    %c0_32 = arith.constant 0 : index
    %c0_33 = arith.constant 0 : index
    %64 = vector.load %arg10[%c0_32, %c0_33] : memref<96x32xf32, #tpu.memory_space<vmem>>, vector<96x32xf32>
    %c0_34 = arith.constant 0 : index
    %c0_35 = arith.constant 0 : index
    %65 = vector.load %arg11[%c0_34, %c0_35] : memref<1x32xf32, #tpu.memory_space<vmem>>, vector<1x32xf32>
    %cst_36 = arith.constant 0.000000e+00 : f32
    %66 = vector.broadcast %cst_36 : f32 to vector<1x8x32xf32>
    %67 = vector.extract_strided_slice %63 {offsets = [0, 0, 0], sizes = [7, 8, 32], strides = [1, 1, 1]} : vector<8x8x32xf32> to vector<7x8x32xf32>
    %68 = tpu.concatenate %66, %67 in 0 : vector<1x8x32xf32>, vector<7x8x32xf32> -> vector<8x8x32xf32>
    %cst_37 = arith.constant 0.000000e+00 : f32
    %69 = vector.broadcast %cst_37 : f32 to vector<1x8x32xf32>
    %70 = vector.extract_strided_slice %63 {offsets = [1, 0, 0], sizes = [7, 8, 32], strides = [1, 1, 1]} : vector<8x8x32xf32> to vector<7x8x32xf32>
    %71 = tpu.concatenate %70, %69 in 0 : vector<7x8x32xf32>, vector<1x8x32xf32> -> vector<8x8x32xf32>
    %72 = tpu.concatenate %68, %63, %71 in 2 : vector<8x8x32xf32>, vector<8x8x32xf32>, vector<8x8x32xf32> -> vector<8x8x96xf32>
    %73 = vector.shape_cast %72 : vector<8x8x96xf32> to vector<64x96xf32>
    %cst_38 = arith.constant dense<0.000000e+00> : vector<64x32xf32>
    %74 = tpu.matmul %73, %64, %cst_38 {dimension_numbers = #tpu.dot_dimension_numbers<[1], [0], [0], [1], [0, 0, 1, 1], [], []>} : vector<64x96xf32>, vector<96x32xf32>, vector<64x32xf32> -> vector<64x32xf32>
    %75 = vector.broadcast %65 : vector<1x32xf32> to vector<64x32xf32>
    %76 = arith.addf %74, %75 : vector<64x32xf32>
    %cst_39 = arith.constant 0.000000e+00 : f32
    %77 = vector.broadcast %cst_39 : f32 to vector<64x32xf32>
    %78 = arith.maximumf %76, %77 : vector<64x32xf32>
    %79 = vector.shape_cast %78 : vector<64x32xf32> to vector<8x8x32xf32>
    %c0_40 = arith.constant 0 : index
    %c0_41 = arith.constant 0 : index
    %80 = vector.load %arg12[%c0_40, %c0_41] : memref<96x32xf32, #tpu.memory_space<vmem>>, vector<96x32xf32>
    %c0_42 = arith.constant 0 : index
    %c0_43 = arith.constant 0 : index
    %81 = vector.load %arg13[%c0_42, %c0_43] : memref<1x32xf32, #tpu.memory_space<vmem>>, vector<1x32xf32>
    %cst_44 = arith.constant 0.000000e+00 : f32
    %82 = vector.broadcast %cst_44 : f32 to vector<8x1x32xf32>
    %83 = vector.extract_strided_slice %79 {offsets = [0, 0, 0], sizes = [8, 7, 32], strides = [1, 1, 1]} : vector<8x8x32xf32> to vector<8x7x32xf32>
    %84 = tpu.concatenate %82, %83 in 1 : vector<8x1x32xf32>, vector<8x7x32xf32> -> vector<8x8x32xf32>
    %cst_45 = arith.constant 0.000000e+00 : f32
    %85 = vector.broadcast %cst_45 : f32 to vector<8x1x32xf32>
    %86 = vector.extract_strided_slice %79 {offsets = [0, 1, 0], sizes = [8, 7, 32], strides = [1, 1, 1]} : vector<8x8x32xf32> to vector<8x7x32xf32>
    %87 = tpu.concatenate %86, %85 in 1 : vector<8x7x32xf32>, vector<8x1x32xf32> -> vector<8x8x32xf32>
    %88 = tpu.concatenate %84, %79, %87 in 2 : vector<8x8x32xf32>, vector<8x8x32xf32>, vector<8x8x32xf32> -> vector<8x8x96xf32>
    %89 = vector.shape_cast %88 : vector<8x8x96xf32> to vector<64x96xf32>
    %cst_46 = arith.constant dense<0.000000e+00> : vector<64x32xf32>
    %90 = tpu.matmul %89, %80, %cst_46 {dimension_numbers = #tpu.dot_dimension_numbers<[1], [0], [0], [1], [0, 0, 1, 1], [], []>} : vector<64x96xf32>, vector<96x32xf32>, vector<64x32xf32> -> vector<64x32xf32>
    %91 = vector.broadcast %81 : vector<1x32xf32> to vector<64x32xf32>
    %92 = arith.addf %90, %91 : vector<64x32xf32>
    %cst_47 = arith.constant 0.000000e+00 : f32
    %93 = vector.broadcast %cst_47 : f32 to vector<64x32xf32>
    %94 = arith.maximumf %92, %93 : vector<64x32xf32>
    %95 = vector.shape_cast %94 : vector<64x32xf32> to vector<8x8x32xf32>
    %c0_48 = arith.constant 0 : index
    %c0_49 = arith.constant 0 : index
    %96 = vector.load %arg14[%c0_48, %c0_49] : memref<96x32xf32, #tpu.memory_space<vmem>>, vector<96x32xf32>
    %c0_50 = arith.constant 0 : index
    %c0_51 = arith.constant 0 : index
    %97 = vector.load %arg15[%c0_50, %c0_51] : memref<1x32xf32, #tpu.memory_space<vmem>>, vector<1x32xf32>
    %cst_52 = arith.constant 0.000000e+00 : f32
    %98 = vector.broadcast %cst_52 : f32 to vector<1x8x32xf32>
    %99 = vector.extract_strided_slice %95 {offsets = [0, 0, 0], sizes = [7, 8, 32], strides = [1, 1, 1]} : vector<8x8x32xf32> to vector<7x8x32xf32>
    %100 = tpu.concatenate %98, %99 in 0 : vector<1x8x32xf32>, vector<7x8x32xf32> -> vector<8x8x32xf32>
    %cst_53 = arith.constant 0.000000e+00 : f32
    %101 = vector.broadcast %cst_53 : f32 to vector<1x8x32xf32>
    %102 = vector.extract_strided_slice %95 {offsets = [1, 0, 0], sizes = [7, 8, 32], strides = [1, 1, 1]} : vector<8x8x32xf32> to vector<7x8x32xf32>
    %103 = tpu.concatenate %102, %101 in 0 : vector<7x8x32xf32>, vector<1x8x32xf32> -> vector<8x8x32xf32>
    %104 = tpu.concatenate %100, %95, %103 in 2 : vector<8x8x32xf32>, vector<8x8x32xf32>, vector<8x8x32xf32> -> vector<8x8x96xf32>
    %105 = vector.shape_cast %104 : vector<8x8x96xf32> to vector<64x96xf32>
    %cst_54 = arith.constant dense<0.000000e+00> : vector<64x32xf32>
    %106 = tpu.matmul %105, %96, %cst_54 {dimension_numbers = #tpu.dot_dimension_numbers<[1], [0], [0], [1], [0, 0, 1, 1], [], []>} : vector<64x96xf32>, vector<96x32xf32>, vector<64x32xf32> -> vector<64x32xf32>
    %107 = vector.broadcast %97 : vector<1x32xf32> to vector<64x32xf32>
    %108 = arith.addf %106, %107 : vector<64x32xf32>
    %cst_55 = arith.constant 0.000000e+00 : f32
    %109 = vector.broadcast %cst_55 : f32 to vector<64x32xf32>
    %110 = arith.maximumf %108, %109 : vector<64x32xf32>
    %111 = vector.shape_cast %110 : vector<64x32xf32> to vector<8x8x32xf32>
    %cst_56 = arith.constant 0xFF800000 : f32
    %112 = vector.broadcast %cst_56 : f32 to vector<1x8x16xf32>
    %113 = vector.extract_strided_slice %1 {offsets = [0, 0, 0], sizes = [7, 8, 16], strides = [1, 1, 1]} : vector<8x8x16xf32> to vector<7x8x16xf32>
    %114 = tpu.concatenate %112, %113 in 0 : vector<1x8x16xf32>, vector<7x8x16xf32> -> vector<8x8x16xf32>
    %cst_57 = arith.constant 0xFF800000 : f32
    %115 = vector.broadcast %cst_57 : f32 to vector<8x1x16xf32>
    %116 = vector.extract_strided_slice %114 {offsets = [0, 0, 0], sizes = [8, 7, 16], strides = [1, 1, 1]} : vector<8x8x16xf32> to vector<8x7x16xf32>
    %117 = tpu.concatenate %115, %116 in 1 : vector<8x1x16xf32>, vector<8x7x16xf32> -> vector<8x8x16xf32>
    %118 = arith.maximumf %117, %114 : vector<8x8x16xf32>
    %cst_58 = arith.constant 0xFF800000 : f32
    %119 = vector.broadcast %cst_58 : f32 to vector<8x1x16xf32>
    %120 = vector.extract_strided_slice %114 {offsets = [0, 1, 0], sizes = [8, 7, 16], strides = [1, 1, 1]} : vector<8x8x16xf32> to vector<8x7x16xf32>
    %121 = tpu.concatenate %120, %119 in 1 : vector<8x7x16xf32>, vector<8x1x16xf32> -> vector<8x8x16xf32>
    %122 = arith.maximumf %118, %121 : vector<8x8x16xf32>
    %cst_59 = arith.constant 0xFF800000 : f32
    %123 = vector.broadcast %cst_59 : f32 to vector<8x1x16xf32>
    %124 = vector.extract_strided_slice %1 {offsets = [0, 0, 0], sizes = [8, 7, 16], strides = [1, 1, 1]} : vector<8x8x16xf32> to vector<8x7x16xf32>
    %125 = tpu.concatenate %123, %124 in 1 : vector<8x1x16xf32>, vector<8x7x16xf32> -> vector<8x8x16xf32>
    %126 = arith.maximumf %122, %125 : vector<8x8x16xf32>
    %127 = arith.maximumf %126, %1 : vector<8x8x16xf32>
    %cst_60 = arith.constant 0xFF800000 : f32
    %128 = vector.broadcast %cst_60 : f32 to vector<8x1x16xf32>
    %129 = vector.extract_strided_slice %1 {offsets = [0, 1, 0], sizes = [8, 7, 16], strides = [1, 1, 1]} : vector<8x8x16xf32> to vector<8x7x16xf32>
    %130 = tpu.concatenate %129, %128 in 1 : vector<8x7x16xf32>, vector<8x1x16xf32> -> vector<8x8x16xf32>
    %131 = arith.maximumf %127, %130 : vector<8x8x16xf32>
    %cst_61 = arith.constant 0xFF800000 : f32
    %132 = vector.broadcast %cst_61 : f32 to vector<1x8x16xf32>
    %133 = vector.extract_strided_slice %1 {offsets = [1, 0, 0], sizes = [7, 8, 16], strides = [1, 1, 1]} : vector<8x8x16xf32> to vector<7x8x16xf32>
    %134 = tpu.concatenate %133, %132 in 0 : vector<7x8x16xf32>, vector<1x8x16xf32> -> vector<8x8x16xf32>
    %cst_62 = arith.constant 0xFF800000 : f32
    %135 = vector.broadcast %cst_62 : f32 to vector<8x1x16xf32>
    %136 = vector.extract_strided_slice %134 {offsets = [0, 0, 0], sizes = [8, 7, 16], strides = [1, 1, 1]} : vector<8x8x16xf32> to vector<8x7x16xf32>
    %137 = tpu.concatenate %135, %136 in 1 : vector<8x1x16xf32>, vector<8x7x16xf32> -> vector<8x8x16xf32>
    %138 = arith.maximumf %131, %137 : vector<8x8x16xf32>
    %139 = arith.maximumf %138, %134 : vector<8x8x16xf32>
    %cst_63 = arith.constant 0xFF800000 : f32
    %140 = vector.broadcast %cst_63 : f32 to vector<8x1x16xf32>
    %141 = vector.extract_strided_slice %134 {offsets = [0, 1, 0], sizes = [8, 7, 16], strides = [1, 1, 1]} : vector<8x8x16xf32> to vector<8x7x16xf32>
    %142 = tpu.concatenate %141, %140 in 1 : vector<8x7x16xf32>, vector<8x1x16xf32> -> vector<8x8x16xf32>
    %143 = arith.maximumf %139, %142 : vector<8x8x16xf32>
    %144 = vector.shape_cast %143 : vector<8x8x16xf32> to vector<64x16xf32>
    %c0_64 = arith.constant 0 : index
    %c0_65 = arith.constant 0 : index
    %145 = vector.load %arg16[%c0_64, %c0_65] : memref<16x32xf32, #tpu.memory_space<vmem>>, vector<16x32xf32>
    %c0_66 = arith.constant 0 : index
    %c0_67 = arith.constant 0 : index
    %146 = vector.load %arg17[%c0_66, %c0_67] : memref<1x32xf32, #tpu.memory_space<vmem>>, vector<1x32xf32>
    %cst_68 = arith.constant dense<0.000000e+00> : vector<64x32xf32>
    %147 = tpu.matmul %144, %145, %cst_68 {dimension_numbers = #tpu.dot_dimension_numbers<[1], [0], [0], [1], [0, 0, 1, 1], [], []>} : vector<64x16xf32>, vector<16x32xf32>, vector<64x32xf32> -> vector<64x32xf32>
    %148 = vector.broadcast %146 : vector<1x32xf32> to vector<64x32xf32>
    %149 = arith.addf %147, %148 : vector<64x32xf32>
    %cst_69 = arith.constant 0.000000e+00 : f32
    %150 = vector.broadcast %cst_69 : f32 to vector<64x32xf32>
    %151 = arith.maximumf %149, %150 : vector<64x32xf32>
    %152 = vector.shape_cast %151 : vector<64x32xf32> to vector<8x8x32xf32>
    %153 = tpu.concatenate %11, %47, %111, %152 in 2 : vector<8x8x32xf32>, vector<8x8x32xf32>, vector<8x8x32xf32>, vector<8x8x32xf32> -> vector<8x8x128xf32>
    %154 = vector.shape_cast %153 : vector<8x8x128xf32> to vector<64x128xf32>
    %cst_70 = arith.constant dense<0.000000e+00> : vector<128xf32>
    %155 = vector.multi_reduction <add>, %154, %cst_70 [0] : vector<64x128xf32> to vector<128xf32>
    %156 = vector.shape_cast %155 : vector<128xf32> to vector<1x128xf32>
    %cst_71 = arith.constant 6.400000e+01 : f32
    %157 = vector.broadcast %cst_71 : f32 to vector<1x128xf32>
    %158 = arith.divf %156, %157 : vector<1x128xf32>
    %c0_72 = arith.constant 0 : index
    %c0_73 = arith.constant 0 : index
    %159 = vector.load %arg18[%c0_72, %c0_73] : memref<128x8xf32, #tpu.memory_space<vmem>>, vector<128x8xf32>
    %cst_74 = arith.constant dense<0.000000e+00> : vector<1x8xf32>
    %160 = tpu.matmul %158, %159, %cst_74 {dimension_numbers = #tpu.dot_dimension_numbers<[1], [0], [0], [1], [0, 0, 1, 1], [], []>} : vector<1x128xf32>, vector<128x8xf32>, vector<1x8xf32> -> vector<1x8xf32>
    %cst_75 = arith.constant 0.000000e+00 : f32
    %161 = vector.broadcast %cst_75 : f32 to vector<1x8xf32>
    %162 = arith.maximumf %160, %161 : vector<1x8xf32>
    %c0_76 = arith.constant 0 : index
    %c0_77 = arith.constant 0 : index
    %163 = vector.load %arg19[%c0_76, %c0_77] : memref<8x128xf32, #tpu.memory_space<vmem>>, vector<8x128xf32>
    %cst_78 = arith.constant dense<0.000000e+00> : vector<1x128xf32>
    %164 = tpu.matmul %162, %163, %cst_78 {dimension_numbers = #tpu.dot_dimension_numbers<[1], [0], [0], [1], [0, 0, 1, 1], [], []>} : vector<1x8xf32>, vector<8x128xf32>, vector<1x128xf32> -> vector<1x128xf32>
    %cst_79 = arith.constant 0.000000e+00 : f32
    %165 = vector.broadcast %cst_79 : f32 to vector<1x128xf32>
    %166 = arith.subf %165, %164 : vector<1x128xf32>
    %167 = math.exp %166 : vector<1x128xf32>
    %cst_80 = arith.constant 1.000000e+00 : f32
    %168 = vector.broadcast %cst_80 : f32 to vector<1x128xf32>
    %169 = arith.addf %168, %167 : vector<1x128xf32>
    %cst_81 = arith.constant 1.000000e+00 : f32
    %170 = vector.broadcast %cst_81 : f32 to vector<1x128xf32>
    %171 = arith.divf %170, %169 : vector<1x128xf32>
    %172 = vector.shape_cast %171 : vector<1x128xf32> to vector<1x1x128xf32>
    %173 = vector.broadcast %172 : vector<1x1x128xf32> to vector<8x8x128xf32>
    %174 = arith.mulf %153, %173 : vector<8x8x128xf32>
    %175 = vector.shape_cast %174 : vector<8x8x128xf32> to vector<1x8x8x128xf32>
    %c0_82 = arith.constant 0 : index
    %c0_83 = arith.constant 0 : index
    %c0_84 = arith.constant 0 : index
    %c0_85 = arith.constant 0 : index
    %176 = vector.load %arg20[%c0_82, %c0_83, %c0_84, %c0_85] : memref<1x8x8x128xf32, #tpu.memory_space<vmem>>, vector<1x8x8x128xf32>
    tpu.vector_store %arg20[%c0_82, %c0_83, %c0_84, %c0_85], %175 {strides = array<i32>} : memref<1x8x8x128xf32, #tpu.memory_space<vmem>>, vector<1x8x8x128xf32>,
    return
  }
  func.func @transform_0(%arg0: i32) -> (i32, i32, i32, i32) {
    %c0_i32 = arith.constant 0 : i32
    %c0_i32_0 = arith.constant 0 : i32
    %c0_i32_1 = arith.constant 0 : i32
    %c0_i32_2 = arith.constant 0 : i32
    return %arg0, %c0_i32, %c0_i32_0, %c0_i32_1 : i32, i32, i32, i32
  }
  func.func @transform_1(%arg0: i32) -> (i32, i32) {
    %c0_i32 = arith.constant 0 : i32
    %c0_i32_0 = arith.constant 0 : i32
    %c0_i32_1 = arith.constant 0 : i32
    return %c0_i32, %c0_i32_0 : i32, i32
  }
  func.func @transform_2(%arg0: i32) -> (i32, i32) {
    %c0_i32 = arith.constant 0 : i32
    %c0_i32_0 = arith.constant 0 : i32
    %c0_i32_1 = arith.constant 0 : i32
    return %c0_i32, %c0_i32_0 : i32, i32
  }
  func.func @transform_3(%arg0: i32) -> (i32, i32) {
    %c0_i32 = arith.constant 0 : i32
    %c0_i32_0 = arith.constant 0 : i32
    %c0_i32_1 = arith.constant 0 : i32
    return %c0_i32, %c0_i32_0 : i32, i32
  }
  func.func @transform_4(%arg0: i32) -> (i32, i32) {
    %c0_i32 = arith.constant 0 : i32
    %c0_i32_0 = arith.constant 0 : i32
    %c0_i32_1 = arith.constant 0 : i32
    return %c0_i32, %c0_i32_0 : i32, i32
  }
  func.func @transform_5(%arg0: i32) -> (i32, i32) {
    %c0_i32 = arith.constant 0 : i32
    %c0_i32_0 = arith.constant 0 : i32
    %c0_i32_1 = arith.constant 0 : i32
    return %c0_i32, %c0_i32_0 : i32, i32
  }
  func.func @transform_6(%arg0: i32) -> (i32, i32) {
    %c0_i32 = arith.constant 0 : i32
    %c0_i32_0 = arith.constant 0 : i32
    %c0_i32_1 = arith.constant 0 : i32
    return %c0_i32, %c0_i32_0 : i32, i32
  }
  func.func @transform_7(%arg0: i32) -> (i32, i32) {
    %c0_i32 = arith.constant 0 : i32
    %c0_i32_0 = arith.constant 0 : i32
    %c0_i32_1 = arith.constant 0 : i32
    return %c0_i32, %c0_i32_0 : i32, i32
  }
  func.func @transform_8(%arg0: i32) -> (i32, i32) {
    %c0_i32 = arith.constant 0 : i32
    %c0_i32_0 = arith.constant 0 : i32
    %c0_i32_1 = arith.constant 0 : i32
    return %c0_i32, %c0_i32_0 : i32, i32
  }
  func.func @transform_9(%arg0: i32) -> (i32, i32) {
    %c0_i32 = arith.constant 0 : i32
    %c0_i32_0 = arith.constant 0 : i32
    %c0_i32_1 = arith.constant 0 : i32
    return %c0_i32, %c0_i32_0 : i32, i32
  }
  func.func @transform_10(%arg0: i32) -> (i32, i32) {
    %c0_i32 = arith.constant 0 : i32
    %c0_i32_0 = arith.constant 0 : i32
    %c0_i32_1 = arith.constant 0 : i32
    return %c0_i32, %c0_i32_0 : i32, i32
  }
  func.func @transform_11(%arg0: i32) -> (i32, i32) {
    %c0_i32 = arith.constant 0 : i32
    %c0_i32_0 = arith.constant 0 : i32
    %c0_i32_1 = arith.constant 0 : i32
    return %c0_i32, %c0_i32_0 : i32, i32
  }
  func.func @transform_12(%arg0: i32) -> (i32, i32) {
    %c0_i32 = arith.constant 0 : i32
    %c0_i32_0 = arith.constant 0 : i32
    %c0_i32_1 = arith.constant 0 : i32
    return %c0_i32, %c0_i32_0 : i32, i32
  }
  func.func @transform_13(%arg0: i32) -> (i32, i32) {
    %c0_i32 = arith.constant 0 : i32
    %c0_i32_0 = arith.constant 0 : i32
    %c0_i32_1 = arith.constant 0 : i32
    return %c0_i32, %c0_i32_0 : i32, i32
  }
  func.func @transform_14(%arg0: i32) -> (i32, i32) {
    %c0_i32 = arith.constant 0 : i32
    %c0_i32_0 = arith.constant 0 : i32
    %c0_i32_1 = arith.constant 0 : i32
    return %c0_i32, %c0_i32_0 : i32, i32
  }
  func.func @transform_15(%arg0: i32) -> (i32, i32) {
    %c0_i32 = arith.constant 0 : i32
    %c0_i32_0 = arith.constant 0 : i32
    %c0_i32_1 = arith.constant 0 : i32
    return %c0_i32, %c0_i32_0 : i32, i32
  }
  func.func @transform_16(%arg0: i32) -> (i32, i32) {
    %c0_i32 = arith.constant 0 : i32
    %c0_i32_0 = arith.constant 0 : i32
    %c0_i32_1 = arith.constant 0 : i32
    return %c0_i32, %c0_i32_0 : i32, i32
  }
  func.func @transform_17(%arg0: i32) -> (i32, i32) {
    %c0_i32 = arith.constant 0 : i32
    %c0_i32_0 = arith.constant 0 : i32
    %c0_i32_1 = arith.constant 0 : i32
    return %c0_i32, %c0_i32_0 : i32, i32
  }
  func.func @transform_18(%arg0: i32) -> (i32, i32) {
    %c0_i32 = arith.constant 0 : i32
    %c0_i32_0 = arith.constant 0 : i32
    %c0_i32_1 = arith.constant 0 : i32
    return %c0_i32, %c0_i32_0 : i32, i32
  }
  func.func @transform_19(%arg0: i32) -> (i32, i32, i32, i32) {
    %c0_i32 = arith.constant 0 : i32
    %c0_i32_0 = arith.constant 0 : i32
    %c0_i32_1 = arith.constant 0 : i32
    %c0_i32_2 = arith.constant 0 : i32
    return %arg0, %c0_i32, %c0_i32_0, %c0_i32_1 : i32, i32, i32, i32
  }
}

</mosaic_0001>

<bundles_post_ra>
// kernel: inception_v3b_forward.1
= control target key start
LH: loop header
LB: loop body
LE: loop exit
PB: predicated region body
PF: predicated region fallthrough
CT: control target
= control target key end

     0   :  { %s4831_s0 = inlined_call_operand.vmem [shape: f32[2,8,8,16], index: 0, kind: input, shape index: {}]   ;;  %s4832_s1 = inlined_call_operand.vmem [shape: f32[16,64], index: 1, kind: input, shape index: {}]   ;;  %s4833_s2 = inlined_call_operand.vmem [shape: f32[1,64], index: 2, kind: input, shape index: {}]   ;;  %s4834_s3 = inlined_call_operand.vmem [shape: f32[48,32], index: 3, kind: input, shape index: {}]   ;;  %s4835_s4 = inlined_call_operand.vmem [shape: f32[1,32], index: 4, kind: input, shape index: {}]   ;;  %s4836_s5 = inlined_call_operand.vmem [shape: f32[96,32], index: 5, kind: input, shape index: {}]   ;;  %s4837_s6 = inlined_call_operand.vmem [shape: f32[1,32], index: 6, kind: input, shape index: {}]   ;;  %s4838_s7 = inlined_call_operand.vmem [shape: f32[48,32], index: 7, kind: input, shape index: {}]   ;;  %s4839_s8 = inlined_call_operand.vmem [shape: f32[1,32], index: 8, kind: input, shape index: {}]   ;;  %s4840_s9 = inlined_call_operand.vmem [shape: f32[96,32], index: 9, kind: input, shape index: {}]   ;;  %s4841_s10 = inlined_call_operand.vmem [shape: f32[1,32], index: 10, kind: input, shape index: {}]   ;;  %s4842_s11 = inlined_call_operand.vmem [shape: f32[96,32], index: 11, kind: input, shape index: {}]   ;;  %s4843_s12 = inlined_call_operand.vmem [shape: f32[1,32], index: 12, kind: input, shape index: {}]   ;;  %s4844_s13 = inlined_call_operand.vmem [shape: f32[96,32], index: 13, kind: input, shape index: {}]   ;;  %s4845_s14 = inlined_call_operand.vmem [shape: f32[1,32], index: 14, kind: input, shape index: {}]   ;;  %s4846_s15 = inlined_call_operand.vmem [shape: f32[16,32], index: 15, kind: input, shape index: {}]   ;;  %s4847_s16 = inlined_call_operand.vmem [shape: f32[1,32], index: 16, kind: input, shape index: {}]   ;;  %s4848_s17 = inlined_call_operand.vmem [shape: f32[128,8], index: 17, kind: input, shape index: {}]   ;;  %s4849_s18 = inlined_call_operand.vmem [shape: f32[8,128], index: 18, kind: input, shape index: {}]   ;;  %s4850_s19 = inlined_call_operand.hbm [shape: f32[2,8,8,128], index: 19, kind: output, shape index: {}]  }
   0x1   :  { %4866 = sst [smem:[#allocation12_spill]] %s4831_s0 }
   0x2   :  { %4867 = sst [smem:[#allocation13_spill]] %s4832_s1 }
   0x3   :  { %4868 = sst [smem:[#allocation14_spill]] %s4833_s2 }
   0x4   :  { %4869 = sst [smem:[#allocation15_spill]] %s4834_s3 }
   0x5   :  { %24 = vsyncpa [#allocation3], 0 }
   0x6   :  { %26 = vsyncpa [#allocation3 + $0x1], 0  ;;  %s3791_s0 = smov 0   ;;  %s3793_s30 = smov 0  }
   0x7   :  { %s3795_s20 = smov 0   ;;  %s3797_s21 = smov 0  }
   0x8 LB: > { %4870 = sst [smem:[#allocation5_spill]] %s3665_s0  ;;  %s3812_s1 = sadd.s32 4294967295, %s3677_s21   ;;  %s3677_s21 = sphi %s3797_s21, %s4889_s21   ;;  %s3673_s20 = sphi %s3795_s20, %s4891_s20   ;;  %s3669_s30 = sphi %s3793_s30, %s4893_s30   ;;  %s3665_s0 = sphi %s3791_s0, %s4892_s0  }
   0x9   : > { %4871 = sst [smem:[#allocation6_spill]] %s3673_s20  ;;  %s2903_s22 = sadd.s32 4294967294, %s3677_s21  }
   0xa   : > { %4872 = sst [smem:[#allocation7_spill]] %s3677_s21  ;;  %s3816_s2 = sadd.s32 1, %s3677_s21  }
   0xb   : > { %4873 = sst [smem:[#allocation8_spill]] %s3816_s2  ;;  %s443_s23 = sadd.s32 1, %s3673_s20 }
   0xc   : > { %s440_s24 = ssub.s32 %s3677_s21, %s3816_s2  ;;  %p453_p0 = scmp.ne.s32.totalorder %s3673_s20, %s3669_s30 }
   0xd   : > { %p441_p1 = scmp.eq.s32.totalorder %s440_s24, 0  ;;  %p454_p2 = scmp.eq.s32.totalorder %s3812_s1, 1 }
   0xe   : > { %p459_p3 = scmp.ne.s32.totalorder %s3669_s30, %s3665_s0  ;;  %p460_p4 = scmp.eq.s32.totalorder %s2903_s22, 1 }
   0xf   : > { %s3827_s25 = scalar_select %p441_p1, %s3673_s20, %s443_s23  }
  0x10   : > { %p3829_p5 = por %p454_p2, %p453_p0  ;;  %p3833_p6 = por %p460_p4, %p459_p3 }
  0x11   : > { %4874 = sst [smem:[#allocation9_spill]] %s3827_s25  ;;  %p2906_p7 = scmp.ge.s32.totalorder %s3677_s21, 1 }
  0x12   : > { %s4875_s3 = scalar_select %p3829_p5, 1, 0 }
  0x13   : > { %s4877_s26 = scalar_select %p3833_p6, 1, 0 }
  0x14   : > { %4876 = sst [smem:[#allocation10_spill]] %s4875_s3  ;;  %p540_p8 = scmp.lt.s32.totalorder %s3677_s21, 3 }
  0x15   : > { %4878 = sst [smem:[#allocation11_spill]] %s4877_s26 }
  0x16   : > { %p541_p9 = pnand %p2906_p7, %p540_p8 }
  0x17   : > { %s4879_s29 = sld [smem:[#allocation13_spill]] (!%p541_p9)  ;;  %p596_p10 = scmp.lt.s32.totalorder (!%p541_p9), %s3812_s1, 1  ;;  %vm618_vm0 = vcmask (!%p541_p9), 130048   ;;  %vm828_vm1 = vcmask (!%p541_p9), 1046528   ;;  %v1253_v53 = vld [vmem:[%s4838_s7] sm:$0xff] (!%p541_p9)  ;;  %v1254_v54 = vld [vmem:[%s4838_s7 + $0x8] sm:$0xff] (!%p541_p9) }
  0x18   : > { %544 = sbr.rel (%p541_p9) target bundleno = 2306 (0x902), region = 96  ;;  %s4880_s26 = sld [smem:[#allocation12_spill]] (!%p541_p9)  ;;  %v3441_v55 = vpack.c.bf16 (!%p541_p9), %v1254_v54, %v1253_v53  ;;  %vm803_vm2 = vcmask (!%p541_p9), 1040384   ;;  %vm869_vm3 = vcmask (!%p541_p9), 261120   ;;  %vm884_vm4 = vcmask (!%p541_p9), 392192  }
  0x19   : > { %s4882_s2 = sld [smem:[#allocation14_spill]] (!%p541_p9)  ;;  %s4862_s21 = smov (!%p541_p9), 96   ;;  %vm1100_vm5 = vcmask (!%p541_p9), 523264   ;;  %vm1115_vm6 = vcmask (!%p541_p9), 785408   ;;  %vm3687_vm7 = vmmov (!%p541_p9), 0   ;;  %vm2727_vm8 = vcmask (!%p541_p9), 64512  }
  0x1a   : > { %s3681_s3 = smov (!%p541_p9), 80   ;;  %s4864_s23 = smov (!%p541_p9), 64  }
  0x1b   : > { %s4884_s28 = smov (!%p541_p9), 96   ;;  %s2989_s27 = sshll.u32 (!%p541_p9), %s3812_s1, 10 }
  0x1c   : > { %s4786_s22 = scalar_lea.hbm (!%p541_p9), %s4850_s19, %s2989_s27 }
  0x1d   : > { %v609_v0 = vld [vmem:[%s4879_s29] sm:$0xff] (!%p541_p9)  ;;  %v610_v1 = vld [vmem:[%s4879_s29 + $0x8] sm:$0xff] (!%p541_p9)  ;;  %s3679_s29 = smov (!%p541_p9), 112  }
  0x1e   : > { %v3401_v2 = vpack.c.bf16 (!%p541_p9), %v610_v1, %v609_v0 }
  0x1f   : > { %s597_s24 = scalar_select %p596_p10, %s3812_s1, 1  ;;  %v3883_v17 = vld [vmem:[%s4882_s2] ss:$0 sm:$0xff] }
  0x20   : > { %3402 = vmatprep.subr.bf16.mxu0 %v3401_v2  ;;  %s3684_s2 = smov 32  }
  0x21   : > { %3404 = vmatpush3.bf16.msra.mxu0 %v3401_v2  ;;  %s2988_s25 = sshll.u32 %s597_s24, 6 }
  0x22   : > { %s3850_s0 = scalar_lea.vmem %s4880_s26, %s2988_s25  ;;  %s4881_s25 = sld [smem:[#allocation15_spill]] }
  0x23   : > { %v601_v3 = vld [vmem:[%s3850_s0] sm:$0xff]  ;;  %v602_v4 = vld [vmem:[%s3850_s0 + $0x8] sm:$0xff]  ;;  %v603_v5 = vld [vmem:[%s3850_s0 + $0x10] sm:$0xff] }
  0x24   : > { %3141 = vmatprep.mubr.msk.f32.mxu0 %vm618_vm0, %v601_v3  ;;  %v604_v6 = vld [vmem:[%s3850_s0 + $0x18] sm:$0xff]  ;;  %v605_v7 = vld [vmem:[%s3850_s0 + $0x20] sm:$0xff]  ;;  %v606_v8 = vld [vmem:[%s3850_s0 + $0x28] sm:$0xff] }
  0x25   : > { %3142 = vmatmul.mubr.msk.f32.vlgmr.msra.gmra.mrb[0].mxu0 %vm618_vm0, %v602_v4  ;;  %v607_v9 = vld [vmem:[%s3850_s0 + $0x30] sm:$0xff]  ;;  %v608_v10 = vld [vmem:[%s3850_s0 + $0x38] sm:$0xff] }
  0x26   : > { %3144 = vmatprep.mubr.msk.f32.mxu0 %vm618_vm0, %v603_v5 }
  0x28   : > { %v756_v11 = vld [vmem:[%s4881_s25] sm:$0xff]  ;;  %v757_v12 = vld [vmem:[%s4881_s25 + $0x8] sm:$0xff]  ;;  %v758_v14 = vld [vmem:[%s4881_s25 + $0x10] sm:$0xff] }
  0x29   : > { %3145 = vmatmul.mubr.msk.f32.gmra.mrb[2].mxu0 %vm618_vm0, %v604_v6  ;;  %v3405_v13 = vpack.c.bf16 %v757_v12, %v756_v11  ;;  %v759_v15 = vld [vmem:[%s4881_s25 + $0x18] sm:$0xff]  ;;  %v760_v18 = vld [vmem:[%s4881_s25 + $0x20] sm:$0xff]  ;;  %v761_v19 = vld [vmem:[%s4881_s25 + $0x28] sm:$0xff] }
  0x2a   : > { %3147 = vmatprep.mubr.msk.f32.mxu0 %vm618_vm0, %v605_v7  ;;  %v3409_v16 = vpack.c.bf16 %v759_v15, %v758_v14  ;;  %v3413_v20 = vpack.c.bf16 %v761_v19, %v760_v18  ;;  %v1255_v15 = vld [vmem:[%s4838_s7 + $0x10] sm:$0xff] }
  0x2b   : > { %3406 = vmatprep.subr.bf16.mxu1 %v3405_v13 }
  0x2c   : > { %3408 = vmatpush3.bf16.msra.mxu1 %v3405_v13 }
  0x2d   : > { %3148 = vmatmul.mubr.msk.f32.gmra.mrb[4].mxu0 %vm618_vm0, %v606_v8  ;;  %3410 = vmatprep.subr.bf16.mxu1 %v3409_v16 }
  0x2e   : > { %3150 = vmatprep.mubr.msk.f32.mxu0 %vm618_vm0, %v607_v9 }
  0x30   : > { %3412 = vmatpush3.bf16.msra.mxu1 %v3409_v16  ;;  %v1256_v16 = vld [vmem:[%s4838_s7 + $0x18] sm:$0xff] }
  0x31   : > { %3151 = vmatmul.mubr.msk.f32.gmra.mrb[6].mxu0 %vm618_vm0, %v608_v10  ;;  %3414 = vmatprep.subr.bf16.mxu1 %v3413_v20 }
  0x34   : > { %3416 = vmatpush3.bf16.msra.mxu1 %v3413_v20 }
  0x35   : > { %3442 = vmatprep.subr.bf16.mxu1 %v3441_v55 }
  0xf8   : > { %v3143_v21 = vpop.f32.mrb[0].mxu0 }
  0xf9   : > { %v715_v22 = vadd.f32 %v3143_v21, %v3883_v17  ;;  %v709_v23 = vpop.f32.mrb[1].mxu0 }
  0xfa   : > { %v710_v24 = vadd.f32 %v3883_v17, %v709_v23 }
  0xfb   : > { %v3893_v25 = vmax.f32 %v715_v22, 0.0  ;;  %v3445_v22 = vpack.c.bf16 %v1256_v16, %v1255_v15 }
  0xfc   : > { %v3895_v26 = vmax.f32 %v710_v24, 0.0  ;;  %v3146_v27 = vpop.f32.mrb[2].mxu0 }
  0xfd   : > { %839 = vrot.lane.b32.xlu1 %v3893_v25, %s3679_s29  ;;  %v719_v28 = vpop.f32.mrb[3].mxu0  ;;  %v772_v29 = vrot.slane %v3893_v25, 7  ;;  %v813_v35 = vrot.slane %v3893_v25, 1  ;;  %v725_v36 = vadd.f32 %v3146_v27, %v3883_v17  ;;  %v1257_v27 = vld [vmem:[%s4838_s7 + $0x20] sm:$0xff] }
  0xfe   : > { %1292 = vrot.lane.b32.xlu0 %v3895_v26, %s4862_s21  ;;  %v771_v32 = vrot.slane %v3895_v26, 7  ;;  %v812_v37 = vrot.slane %v3895_v26, 1  ;;  %v720_v38 = vadd.f32 %v3883_v17, %v719_v28  ;;  %v1258_v28 = vld [vmem:[%s4838_s7 + $0x28] sm:$0xff] }
  0xff   : > { %v3916_v39 = vsel %vm828_vm1, %v813_v35, 0.0  ;;  %v3918_v40 = vmax.f32 %v725_v36, 0.0 }
 0x100   : > { %v3149_v30 = vpop.f32.mrb[4].mxu0  ;;  %v3923_v41 = vsel %vm828_vm1, %v812_v37, 0.0  ;;  %v3925_v42 = vmax.f32 %v720_v38, 0.0 }
 0x101   : > { %1294 = vrot.lane.b32.xlu1 %v3893_v25, %s4862_s21  ;;  %v729_v31 = vpop.f32.mrb[5].mxu0  ;;  %v774_v43 = vrot.slane %v3918_v40, 7  ;;  %v815_v45 = vrot.slane %v3918_v40, 1  ;;  %v735_v46 = vadd.f32 %v3149_v30, %v3883_v17  ;;  %v3449_v30 = vpack.c.bf16 %v1258_v28, %v1257_v27 }
 0x102   : > { %781 = vrot.lane.b32.xlu0 %v772_v29, %s4862_s21  ;;  %v773_v44 = vrot.slane %v3925_v42, 7  ;;  %v814_v47 = vrot.slane %v3925_v42, 1  ;;  %v730_v48 = vadd.f32 %v3883_v17, %v729_v31 }
 0x103   : > { %v3948_v49 = vsel %vm828_vm1, %v815_v45, 0.0  ;;  %v3950_v50 = vmax.f32 %v735_v46, 0.0 }
 0x104   : > { %v3152_v33 = vpop.f32.mrb[6].mxu0  ;;  %v3955_v51 = vsel %vm828_vm1, %v814_v47, 0.0  ;;  %v3957_v52 = vmax.f32 %v730_v48, 0.0 }
 0x105   : > { %837 = vrot.lane.b32.xlu1 %v3895_v26, %s3679_s29  ;;  %v739_v34 = vpop.f32.mrb[7].mxu0  ;;  %v776_v56 = vrot.slane %v3950_v50, 7  ;;  %v745_v58 = vadd.f32 %v3152_v33, %v3883_v17  ;;  %v817_v0 = vrot.slane %v3950_v50, 1 }
 0x106   : > { %779 = vrot.lane.b32.xlu0 %v771_v32, %s4862_s21  ;;  %v775_v57 = vrot.slane %v3957_v52, 7  ;;  %v740_v59 = vadd.f32 %v3883_v17, %v739_v34  ;;  %v816_v1 = vrot.slane %v3957_v52, 1 }
 0x107   : > { %v3977_v60 = vmax.f32 %v745_v58, 0.0  ;;  %v3998_v2 = vsel %vm828_vm1, %v817_v0, 0.0 }
 0x108   : > { %v3980_v61 = vmax.f32 %v740_v59, 0.0  ;;  %v4003_v3 = vsel %vm828_vm1, %v816_v1, 0.0 }
 0x109   : > { %1262 = vrot.lane.b32.xlu1 %v772_v29, %s3681_s3  ;;  %v778_v62 = vrot.slane %v3977_v60, 7  ;;  %v819_v4 = vrot.slane %v3977_v60, 1 }
 0x10a   : > { %1260 = vrot.lane.b32.xlu0 %v771_v32, %s3681_s3  ;;  %v777_v63 = vrot.slane %v3980_v61, 7  ;;  %v818_v5 = vrot.slane %v3980_v61, 1 }
 0x10b   : > { %v4016_v6 = vsel %vm828_vm1, %v819_v4, 0.0 }
 0x10c   : > { %v4021_v7 = vsel %vm828_vm1, %v818_v5, 0.0 }
 0x10d   : > { %1326 = vrot.lane.b32.xlu1 %v3916_v39, %s3679_s29 }
 0x10e   : > { %1324 = vrot.lane.b32.xlu0 %v3923_v41, %s3679_s29 }
 0x111   : > { %843 = vrot.lane.b32.xlu1 %v3918_v40, %s3679_s29 }
 0x112   : > { %841 = vrot.lane.b32.xlu0 %v3925_v42, %s3679_s29 }
 0x115   : > { %1298 = vrot.lane.b32.xlu1 %v3918_v40, %s4862_s21 }
 0x116   : > { %1296 = vrot.lane.b32.xlu0 %v3925_v42, %s4862_s21 }
 0x119   : > { %785 = vrot.lane.b32.xlu1 %v774_v43, %s4862_s21 }
 0x11a   : > { %783 = vrot.lane.b32.xlu0 %v773_v44, %s4862_s21 }
 0x11d   : > { %1266 = vrot.lane.b32.xlu1 %v774_v43, %s3681_s3 }
 0x11e   : > { %1264 = vrot.lane.b32.xlu0 %v773_v44, %s3681_s3 }
 0x121   : > { %1330 = vrot.lane.b32.xlu1 %v3948_v49, %s3679_s29 }
 0x122   : > { %1328 = vrot.lane.b32.xlu0 %v3955_v51, %s3679_s29 }
 0x125   : > { %847 = vrot.lane.b32.xlu1 %v3950_v50, %s3679_s29 }
 0x126   : > { %845 = vrot.lane.b32.xlu0 %v3957_v52, %s3679_s29 }
 0x129   : > { %789 = vrot.lane.b32.xlu1 %v776_v56, %s4862_s21 }
 0x12a   : > { %787 = vrot.lane.b32.xlu0 %v775_v57, %s4862_s21 }
 0x12d   : > { %1270 = vrot.lane.b32.xlu1 %v776_v56, %s3681_s3 }
 0x12e   : > { %1268 = vrot.lane.b32.xlu0 %v775_v57, %s3681_s3 }
 0x131   : > { %851 = vrot.lane.b32.xlu1 %v3977_v60, %s3679_s29 }
 0x132   : > { %849 = vrot.lane.b32.xlu0 %v3980_v61, %s3679_s29 }
 0x135   : > { %793 = vrot.lane.b32.xlu1 %v778_v62, %s4862_s21 }
 0x136   : > { %791 = vrot.lane.b32.xlu0 %v777_v63, %s4862_s21 }
 0x139   : > { %1302 = vrot.lane.b32.xlu1 %v3950_v50, %s4862_s21 }
 0x13a   : > { %1300 = vrot.lane.b32.xlu0 %v3957_v52, %s4862_s21 }
 0x13d   : > { %1334 = vrot.lane.b32.xlu1 %v3998_v2, %s3679_s29 }
 0x13e   : > { %1332 = vrot.lane.b32.xlu0 %v4003_v3, %s3679_s29 }
 0x141   : > { %1274 = vrot.lane.b32.xlu1 %v778_v62, %s3681_s3 }
 0x142   : > { %1304 = vrot.lane.b32.xlu0 %v3980_v61, %s4862_s21 }
 0x145   : > { %1306 = vrot.lane.b32.xlu1 %v3977_v60, %s4862_s21 }
 0x146   : > { %1272 = vrot.lane.b32.xlu0 %v777_v63, %s3681_s3 }
 0x149   : > { %1338 = vrot.lane.b32.xlu1 %v4016_v6, %s3679_s29 }
 0x14a   : > { %1336 = vrot.lane.b32.xlu0 %v4021_v7, %s3679_s29 }
 0x16f   : > { %v840_v8 = vpop.permute.xlu1 %839 }
 0x170   : > { %v4025_v9 = vpop.permute.xlu0 %1292 }
 0x173   : > { %v4027_v10 = vpop.permute.xlu1 %1294 }
 0x174   : > { %v782_v11 = vpop.permute.xlu0 %781 }
 0x175   : > { %v805_v12 = vsel %vm803_vm2, 0.0, %v782_v11 }
 0x176   : > { %v862_v17 = vsel %vm618_vm0, %v805_v12, %v840_v8 }
 0x177   : > { %v838_v13 = vpop.permute.xlu1 %837  ;;  %v871_v24 = vsel %vm869_vm3, %v862_v17, %v3916_v39 }
 0x178   : > { %v780_v14 = vpop.permute.xlu0 %779 }
 0x179   : > { %v804_v18 = vsel %vm803_vm2, 0.0, %v780_v14 }
 0x17a   : > { %v861_v19 = vsel %vm618_vm0, %v804_v18, %v838_v13 }
 0x17b   : > { %v1263_v20 = vpop.permute.xlu1 %1262  ;;  %v870_v21 = vsel %vm869_vm3, %v861_v19, %v3923_v41 }
 0x17c   : > { %3165 = vmatprep.mubr.msk.f32.mxu1 %vm884_vm4, %v870_v21  ;;  %v1261_v23 = vpop.permute.xlu0 %1260  ;;  %v1285_v17 = vsel %vm803_vm2, 0.0, %v1263_v20 }
 0x17d   : > { %3166 = vmatmul.mubr.msk.f32.vlgmr.msra.gmra.mrb[0].mxu1 %vm884_vm4, %v871_v24  ;;  %v1284_v13 = vsel %vm803_vm2, 0.0, %v1261_v23 }
 0x17e   : > { %3444 = vmatpush3.bf16.msra.mxu1 %v3441_v55  ;;  %v1348_v18 = vsel %vm618_vm0, %v1284_v13, %v4025_v9 }
 0x17f   : > { %v1327_v29 = vpop.permute.xlu1 %1326  ;;  %3446 = vmatprep.subr.bf16.mxu1 %v3445_v22 }
 0x180   : > { %v1325_v31 = vpop.permute.xlu0 %1324 }
 0x182   : > { %3448 = vmatpush3.bf16.msra.mxu1 %v3445_v22  ;;  %v1356_v22 = vsel %vm869_vm3, %v1348_v18, %v1325_v31  ;;  %v1033_v18 = vld [vmem:[%s4836_s5 + $0x58] sm:$0xff] }
 0x183   : > { %v844_v32 = vpop.permute.xlu1 %843  ;;  %3450 = vmatprep.subr.bf16.mxu1 %v3449_v30 }
 0x184   : > { %v842_v33 = vpop.permute.xlu0 %841 }
 0x186   : > { %3452 = vmatpush3.bf16.msra.mxu1 %v3449_v30 }
 0x187   : > { %v1299_v34 = vpop.permute.xlu1 %1298 }
 0x188   : > { %v1297_v35 = vpop.permute.xlu0 %1296 }
 0x18b   : > { %v786_v36 = vpop.permute.xlu1 %785 }
 0x18c   : > { %v807_v37 = vsel %vm803_vm2, 0.0, %v786_v36  ;;  %v784_v38 = vpop.permute.xlu0 %783 }
 0x18d   : > { %v864_v39 = vsel %vm618_vm0, %v807_v37, %v844_v32  ;;  %v806_v41 = vsel %vm803_vm2, 0.0, %v784_v38 }
 0x18e   : > { %v863_v43 = vsel %vm618_vm0, %v806_v41, %v842_v33  ;;  %v873_v47 = vsel %vm869_vm3, %v864_v39, %v3948_v49 }
 0x18f   : > { %v1267_v44 = vpop.permute.xlu1 %1266  ;;  %v872_v45 = vsel %vm869_vm3, %v863_v43, %v3955_v51 }
 0x190   : > { %3168 = vmatprep.mubr.msk.f32.mxu1 %vm884_vm4, %v872_v45  ;;  %v1265_v46 = vpop.permute.xlu0 %1264  ;;  %v1287_v24 = vsel %vm803_vm2, 0.0, %v1267_v44 }
 0x191   : > { %3169 = vmatmul.mubr.msk.f32.gmra.mrb[2].mxu1 %vm884_vm4, %v873_v47  ;;  %v1286_v23 = vsel %vm803_vm2, 0.0, %v1265_v46  ;;  %v1351_v30 = vsel %vm618_vm0, %v1287_v24, %v1299_v34  ;;  %v1507_v24 = vld [vmem:[%s4840_s9] sm:$0xff] }
 0x192   : > { %v1350_v27 = vsel %vm618_vm0, %v1286_v23, %v1297_v35 }
 0x193   : > { %v1331_v48 = vpop.permute.xlu1 %1330 }
 0x194   : > { %v1329_v53 = vpop.permute.xlu0 %1328 }
 0x197   : > { %v848_v54 = vpop.permute.xlu1 %847 }
 0x198   : > { %v846_v55 = vpop.permute.xlu0 %845 }
 0x19b   : > { %v790_v56 = vpop.permute.xlu1 %789 }
 0x19c   : > { %v809_v57 = vsel %vm803_vm2, 0.0, %v790_v56  ;;  %v788_v58 = vpop.permute.xlu0 %787  ;;  %v1023_v56 = vld [vmem:[%s4836_s5 + $0x8] sm:$0xff] }
 0x19d   : > { %v866_v59 = vsel %vm618_vm0, %v809_v57, %v848_v54  ;;  %v808_v51 = vsel %vm803_vm2, 0.0, %v788_v58  ;;  %v3682_v54 = vmov 0.0   ;;  %v1024_v58 = vld [vmem:[%s4836_s5 + $0x10] sm:$0xff] }
 0x19e   : > { %v865_v62 = vsel %vm618_vm0, %v808_v51, %v846_v55  ;;  %v875_v1 = vsel %vm869_vm3, %v866_v59, %v3998_v2  ;;  %1082 = vrot.lane.b32.xlu1 %v3682_v54, %s4864_s23  ;;  %v1022_v55 = vld [vmem:[%s4836_s5] sm:$0xff]  ;;  %v1025_v59 = vld [vmem:[%s4836_s5 + $0x18] sm:$0xff] }
 0x19f   : > { %v1271_v63 = vpop.permute.xlu1 %1270  ;;  %v874_v49 = vsel %vm869_vm3, %v865_v62, %v4003_v3  ;;  %v3417_v57 = vpack.c.bf16 %v1023_v56, %v1022_v55  ;;  %v3421_v51 = vpack.c.bf16 %v1025_v59, %v1024_v58  ;;  %v2919_v62 = vld [vmem:[%s4835_s4] ss:$0 sm:$0xff] }
 0x1a0   : > { %3171 = vmatprep.mubr.msk.f32.mxu1 %vm884_vm4, %v874_v49  ;;  %v1269_v0 = vpop.permute.xlu0 %1268  ;;  %v1289_v35 = vsel %vm803_vm2, 0.0, %v1271_v63  ;;  %v1026_v63 = vld [vmem:[%s4836_s5 + $0x20] sm:$0xff]  ;;  %v1027_v49 = vld [vmem:[%s4836_s5 + $0x28] sm:$0xff] }
 0x1a1   : > { %3172 = vmatmul.mubr.msk.f32.gmra.mrb[4].mxu1 %vm884_vm4, %v875_v1  ;;  %v1288_v31 = vsel %vm803_vm2, 0.0, %v1269_v0  ;;  %3418 = vmatprep.subr.bf16.mxu0 %v3417_v57  ;;  %v1028_v0 = vld [vmem:[%s4836_s5 + $0x30] sm:$0xff]  ;;  %v3425_v1 = vpack.c.bf16 %v1027_v49, %v1026_v63 }
 0x1a2   : > { %3420 = vmatpush3.bf16.msra.mxu0 %v3417_v57 }
 0x1a3   : > { %v852_v4 = vpop.permute.xlu1 %851  ;;  %3422 = vmatprep.subr.bf16.mxu0 %v3421_v51 }
 0x1a4   : > { %v850_v5 = vpop.permute.xlu0 %849 }
 0x1a6   : > { %3424 = vmatpush3.bf16.msra.mxu0 %v3421_v51 }
 0x1a7   : > { %v794_v8 = vpop.permute.xlu1 %793  ;;  %3426 = vmatprep.subr.bf16.mxu0 %v3425_v1 }
 0x1a8   : > { %v811_v11 = vsel %vm803_vm2, 0.0, %v794_v8  ;;  %v792_v12 = vpop.permute.xlu0 %791 }
 0x1a9   : > { %v868_v14 = vsel %vm618_vm0, %v811_v11, %v852_v4  ;;  %v810_v3 = vsel %vm803_vm2, 0.0, %v792_v12  ;;  %v1029_v4 = vld [vmem:[%s4836_s5 + $0x38] sm:$0xff]  ;;  %v1030_v11 = vld [vmem:[%s4836_s5 + $0x40] sm:$0xff]  ;;  %v1031_v12 = vld [vmem:[%s4836_s5 + $0x48] sm:$0xff] }
 0x1aa   : > { %v867_v15 = vsel %vm618_vm0, %v810_v3, %v850_v5  ;;  %v877_v21 = vsel %vm869_vm3, %v868_v14, %v4016_v6  ;;  %v1358_v6 = vsel %vm869_vm3, %v1350_v27, %v1329_v53  ;;  %v3429_v8 = vpack.c.bf16 %v1029_v4, %v1028_v0  ;;  %3428 = vmatpush3.bf16.msra.mxu0 %v3425_v1  ;;  %v1508_v27 = vld [vmem:[%s4840_s9 + $0x8] sm:$0xff] }
 0x1ab   : > { %v1303_v16 = vpop.permute.xlu1 %1302  ;;  %v876_v2 = vsel %vm869_vm3, %v867_v15, %v4021_v7  ;;  %v1349_v7 = vsel %vm618_vm0, %v1285_v17, %v4027_v10  ;;  %v1359_v10 = vsel %vm869_vm3, %v1351_v30, %v1331_v48  ;;  %v1032_v17 = vld [vmem:[%s4836_s5 + $0x50] sm:$0xff] }
 0x1ac   : > { %3174 = vmatprep.mubr.msk.f32.mxu1 %vm884_vm4, %v876_v2  ;;  %v1301_v19 = vpop.permute.xlu0 %1300  ;;  %v1357_v9 = vsel %vm869_vm3, %v1349_v7, %v1327_v29  ;;  %v1353_v37 = vsel %vm618_vm0, %v1289_v35, %v1303_v16  ;;  %3430 = vmatprep.subr.bf16.mxu0 %v3429_v8  ;;  %v3433_v16 = vpack.c.bf16 %v1031_v12, %v1030_v11 }
 0x1ad   : > { %3175 = vmatmul.mubr.msk.f32.gmra.mrb[6].mxu1 %vm884_vm4, %v877_v21  ;;  %v1352_v29 = vsel %vm618_vm0, %v1288_v31, %v1301_v19  ;;  %v3437_v19 = vpack.c.bf16 %v1033_v18, %v1032_v17 }
 0x1ae   : > { %3225 = vmatprep.mubr.msk.f32.mxu1 %vm884_vm4, %v1356_v22  ;;  %3432 = vmatpush3.bf16.msra.mxu0 %v3429_v8 }
 0x1af   : > { %v1335_v20 = vpop.permute.xlu1 %1334  ;;  %3434 = vmatprep.subr.bf16.mxu0 %v3433_v16 }
 0x1b0   : > { %v1333_v28 = vpop.permute.xlu0 %1332  ;;  %v1361_v34 = vsel %vm869_vm3, %v1353_v37, %v1335_v20 }
 0x1b1   : > { %3226 = vmatmul.mubr.msk.f32.vlgmr.msra.gmra.mrb[8].mxu1 %vm884_vm4, %v1357_v9  ;;  %v1360_v36 = vsel %vm869_vm3, %v1352_v29, %v1333_v28  ;;  %v4186_v28 = vpack.c.bf16 %v1508_v27, %v1507_v24 }
 0x1b2   : > { %3228 = vmatprep.mubr.msk.f32.mxu1 %vm884_vm4, %v1358_v6  ;;  %3436 = vmatpush3.bf16.msra.mxu0 %v3433_v16 }
 0x1b3   : > { %v1275_v32 = vpop.permute.xlu1 %1274  ;;  %3438 = vmatprep.subr.bf16.mxu0 %v3437_v19 }
 0x1b4   : > { %v1305_v33 = vpop.permute.xlu0 %1304  ;;  %v1291_v44 = vsel %vm803_vm2, 0.0, %v1275_v32 }
 0x1b5   : > { %3229 = vmatmul.mubr.msk.f32.gmra.mrb[10].mxu1 %vm884_vm4, %v1359_v10 }
 0x1b6   : > { %3231 = vmatprep.mubr.msk.f32.mxu1 %vm884_vm4, %v1360_v36  ;;  %3440 = vmatpush3.bf16.msra.mxu0 %v3437_v19 }
 0x1b7   : > { %v1307_v38 = vpop.permute.xlu1 %1306  ;;  %3454 = vmatprep.subr.bf16.mxu0 %v4186_v28 }
 0x1b8   : > { %v1273_v39 = vpop.permute.xlu0 %1272  ;;  %v1355_v47 = vsel %vm618_vm0, %v1291_v44, %v1307_v38 }
 0x1b9   : > { %v1290_v41 = vsel %vm803_vm2, 0.0, %v1273_v39  ;;  %3232 = vmatmul.mubr.msk.f32.gmra.mrb[12].mxu1 %vm884_vm4, %v1361_v34  ;;  %v2937_v39 = vld [vmem:[%s4839_s8] ss:$0 sm:$0xff] }
 0x1ba   : > { %v1354_v45 = vsel %vm618_vm0, %v1290_v41, %v1305_v33 }
 0x1bb   : > { %v1339_v43 = vpop.permute.xlu1 %1338 }
 0x1bc   : > { %v1337_v46 = vpop.permute.xlu0 %1336  ;;  %v1363_v53 = vsel %vm869_vm3, %v1355_v47, %v1339_v43 }
 0x1bd   : > { %v1362_v48 = vsel %vm869_vm3, %v1354_v45, %v1337_v46 }
 0x1be   : > { %3234 = vmatprep.mubr.msk.f32.mxu1 %vm884_vm4, %v1362_v48 }
 0x1bf   : > { %3235 = vmatmul.mubr.msk.f32.gmra.mrb[14].mxu1 %vm884_vm4, %v1363_v53 }
 0x210   : > { %v4259_v18 = vpop.permute.xlu1 %1082 }
 0x250   : > { %v3167_v5 = vpop.f32.mrb[0].mxu1 }
 0x251   : > { %v981_v13 = vadd.f32 %v3167_v5, %v2919_v62  ;;  %v975_v14 = vpop.f32.mrb[1].mxu1 }
 0x252   : > { %v4152_v15 = vadd.f32 %v2919_v62, %v975_v14 }
 0x253   : > { %v4150_v3 = vmax.f32 %v981_v13, 0.0 }
 0x254   : > { %v1014_v2 = vmax.f32 %v4152_v15, 0.0 }
 0x255   : > { %1068 = vrot.lane.b32.xlu0 %v4150_v3, %s4864_s23  ;;  %1045 = vrot.lane.b32.xlu1 %v4150_v3, %s3684_s2 }
 0x259   : > { %1043 = vrot.lane.b32.xlu0 %v1014_v2, %s3684_s2 }
 0x264   : > { %v3170_v21 = vpop.f32.mrb[2].mxu1 }
 0x265   : > { %v991_v22 = vadd.f32 %v3170_v21, %v2919_v62  ;;  %v985_v23 = vpop.f32.mrb[3].mxu1 }
 0x266   : > { %v986_v20 = vadd.f32 %v2919_v62, %v985_v23  ;;  %v1509_v23 = vld [vmem:[%s4840_s9 + $0x10] sm:$0xff] }
 0x267   : > { %v4168_v7 = vmax.f32 %v991_v22, 0.0 }
 0x268   : > { %v4174_v9 = vmax.f32 %v986_v20, 0.0  ;;  %v1510_v20 = vld [vmem:[%s4840_s9 + $0x18] sm:$0xff] }
 0x269   : > { %1072 = vrot.lane.b32.xlu0 %v4168_v7, %s4864_s23  ;;  %1049 = vrot.lane.b32.xlu1 %v4168_v7, %s3684_s2 }
 0x26d   : > { %1047 = vrot.lane.b32.xlu0 %v4174_v9, %s3684_s2  ;;  %1070 = vrot.lane.b32.xlu1 %v4174_v9, %s4864_s23 }
 0x274   : > { %v3173_v6 = vpop.f32.mrb[4].mxu1 }
 0x275   : > { %v1001_v30 = vadd.f32 %v3173_v6, %v2919_v62  ;;  %v995_v31 = vpop.f32.mrb[5].mxu1 }
 0x276   : > { %v996_v10 = vadd.f32 %v2919_v62, %v995_v31 }
 0x277   : > { %v4189_v32 = vmax.f32 %v1001_v30, 0.0  ;;  %v3457_v30 = vpack.c.bf16 %v1510_v20, %v1509_v23 }
 0x278   : > { %v4195_v29 = vmax.f32 %v996_v10, 0.0 }
 0x279   : > { %1076 = vrot.lane.b32.xlu0 %v4189_v32, %s4864_s23  ;;  %1053 = vrot.lane.b32.xlu1 %v4189_v32, %s3684_s2 }
 0x27d   : > { %1051 = vrot.lane.b32.xlu0 %v4195_v29, %s3684_s2  ;;  %1074 = vrot.lane.b32.xlu1 %v4195_v29, %s4864_s23 }
 0x280   : > { %v3176_v33 = vpop.f32.mrb[6].mxu1 }
 0x281   : > { %v1011_v36 = vadd.f32 %v3176_v33, %v2919_v62  ;;  %v1005_v35 = vpop.f32.mrb[7].mxu1  ;;  %v1511_v33 = vld [vmem:[%s4840_s9 + $0x20] sm:$0xff] }
 0x282   : > { %v1006_v38 = vadd.f32 %v2919_v62, %v1005_v35  ;;  %v1514_v35 = vld [vmem:[%s4840_s9 + $0x38] sm:$0xff] }
 0x283   : > { %v1021_v37 = vmax.f32 %v1011_v36, 0.0  ;;  %v1512_v36 = vld [vmem:[%s4840_s9 + $0x28] sm:$0xff] }
 0x284   : > { %v3227_v34 = vpop.f32.mrb[8].mxu1  ;;  %v4206_v43 = vmax.f32 %v1006_v38, 0.0  ;;  %v1515_v38 = vld [vmem:[%s4840_s9 + $0x40] sm:$0xff] }
 0x285   : > { %1080 = vrot.lane.b32.xlu0 %v1021_v37, %s4864_s23  ;;  %1057 = vrot.lane.b32.xlu1 %v1021_v37, %s3684_s2  ;;  %v1460_v41 = vpop.f32.mrb[9].mxu1  ;;  %v1466_v44 = vadd.f32 %v3227_v34, %v2937_v39 }
 0x286   : > { %v4214_v48 = vadd.f32 %v2937_v39, %v1460_v41 }
 0x287   : > { %v4212_v47 = vmax.f32 %v1466_v44, 0.0  ;;  %v1517_v44 = vld [vmem:[%s4840_s9 + $0x50] sm:$0xff] }
 0x288   : > { %v3230_v45 = vpop.f32.mrb[10].mxu1  ;;  %v1499_v57 = vmax.f32 %v4214_v48, 0.0 }
 0x289   : > { %v1470_v46 = vpop.f32.mrb[11].mxu1  ;;  %1055 = vrot.lane.b32.xlu0 %v4206_v43, %s3684_s2  ;;  %1078 = vrot.lane.b32.xlu1 %v4206_v43, %s4864_s23  ;;  %v1476_v53 = vadd.f32 %v3230_v45, %v2937_v39  ;;  %v1518_v45 = vld [vmem:[%s4840_s9 + $0x58] sm:$0xff] }
 0x28a   : > { %v1471_v59 = vadd.f32 %v2937_v39, %v1470_v46 }
 0x28b   : > { %v4221_v58 = vmax.f32 %v1476_v53, 0.0 }
 0x28c   : > { %v3233_v55 = vpop.f32.mrb[12].mxu1  ;;  %v4228_v62 = vmax.f32 %v1471_v59, 0.0 }
 0x28d   : > { %1552 = vrot.lane.b32.xlu0 %v4212_v47, %s4864_s23  ;;  %1530 = vrot.lane.b32.xlu1 %v4212_v47, %s3684_s2  ;;  %v1480_v56 = vpop.f32.mrb[13].mxu1  ;;  %v1486_v63 = vadd.f32 %v3233_v55, %v2937_v39 }
 0x28e   : > { %v1481_v1 = vadd.f32 %v2937_v39, %v1480_v56  ;;  %v3473_v56 = vpack.c.bf16 %v1518_v45, %v1517_v44  ;;  %v1735_v44 = vld [vmem:[%s4842_s11 + $0x18] sm:$0xff] }
 0x28f   : > { %v4234_v0 = vmax.f32 %v1486_v63, 0.0 }
 0x290   : > { %v4240_v4 = vmax.f32 %v1481_v1, 0.0 }
 0x291   : > { %1528 = vrot.lane.b32.xlu0 %v1499_v57, %s3684_s2  ;;  %1534 = vrot.lane.b32.xlu1 %v4221_v58, %s3684_s2 }
 0x292   : > { %v3236_v51 = vpop.f32.mrb[14].mxu1 }
 0x293   : > { %v1490_v49 = vpop.f32.mrb[15].mxu1  ;;  %v1496_v8 = vadd.f32 %v3236_v51, %v2937_v39 }
 0x294   : > { %v1491_v5 = vadd.f32 %v2937_v39, %v1490_v49 }
 0x295   : > { %1556 = vrot.lane.b32.xlu0 %v4221_v58, %s4864_s23  ;;  %1554 = vrot.lane.b32.xlu1 %v4228_v62, %s4864_s23  ;;  %v1506_v12 = vmax.f32 %v1496_v8, 0.0 }
 0x296   : > { %v4246_v11 = vmax.f32 %v1491_v5, 0.0 }
 0x299   : > { %1532 = vrot.lane.b32.xlu0 %v4228_v62, %s3684_s2  ;;  %1538 = vrot.lane.b32.xlu1 %v4234_v0, %s3684_s2 }
 0x29d   : > { %1560 = vrot.lane.b32.xlu0 %v4234_v0, %s4864_s23  ;;  %1558 = vrot.lane.b32.xlu1 %v4240_v4, %s4864_s23 }
 0x2a1   : > { %1536 = vrot.lane.b32.xlu0 %v4240_v4, %s3684_s2  ;;  %1562 = vrot.lane.b32.xlu1 %v4246_v11, %s4864_s23 }
 0x2a5   : > { %1540 = vrot.lane.b32.xlu0 %v4246_v11, %s3684_s2  ;;  %1542 = vrot.lane.b32.xlu1 %v1506_v12, %s3684_s2 }
 0x2a9   : > { %1564 = vrot.lane.b32.xlu0 %v1506_v12, %s4864_s23  ;;  %s4883_s23 = smov 64  }
 0x2c7   : > { %v1069_v13 = vpop.permute.xlu0 %1068  ;;  %v1046_v19 = vpop.permute.xlu1 %1045 }
 0x2c8   : > { %v1093_v24 = vsel %vm869_vm3, %v1014_v2, %v1046_v19  ;;  %v3461_v2 = vpack.c.bf16 %v1512_v36, %v1511_v33 }
 0x2cb   : > { %v1044_v14 = vpop.permute.xlu0 %1043 }
 0x2cc   : > { %v1092_v16 = vsel %vm869_vm3, 0.0, %v1044_v14 }
 0x2cd   : > { %v1101_v17 = vsel %vm1100_vm5, %v1092_v16, %v1069_v13 }
 0x2ce   : > { %3201 = vmatprep.mubr.msk.f32.mxu0 %vm1115_vm6, %v1101_v17 }
 0x2db   : > { %v1050_v21 = vpop.permute.xlu1 %1049  ;;  %v1073_v22 = vpop.permute.xlu0 %1072 }
 0x2dc   : > { %v1095_v46 = vsel %vm869_vm3, %v4174_v9, %v1050_v21 }
 0x2df   : > { %v1071_v27 = vpop.permute.xlu1 %1070  ;;  %v1048_v6 = vpop.permute.xlu0 %1047 }
 0x2e0   : > { %v1102_v31 = vsel %vm1100_vm5, %v1093_v24, %v1071_v27  ;;  %v1094_v10 = vsel %vm869_vm3, %v4150_v3, %v1048_v6  ;;  %v1513_v3 = vld [vmem:[%s4840_s9 + $0x30] sm:$0xff] }
 0x2e1   : > { %3202 = vmatmul.mubr.msk.f32.vlgmr.msra.gmra.mrb[8].mxu0 %vm1115_vm6, %v1102_v31  ;;  %v1103_v15 = vsel %vm1100_vm5, %v1094_v10, %v1073_v22  ;;  %v3465_v37 = vpack.c.bf16 %v1514_v35, %v1513_v3 }
 0x2e2   : > { %3204 = vmatprep.mubr.msk.f32.mxu0 %vm1115_vm6, %v1103_v15  ;;  %3456 = vmatpush3.bf16.msra.mxu0 %v4186_v28  ;;  %v1516_v28 = vld [vmem:[%s4840_s9 + $0x48] sm:$0xff] }
 0x2e3   : > { %3458 = vmatprep.subr.bf16.mxu0 %v3457_v30  ;;  %v3469_v41 = vpack.c.bf16 %v1516_v28, %v1515_v38 }
 0x2e6   : > { %3460 = vmatpush3.bf16.msra.mxu0 %v3457_v30 }
 0x2e7   : > { %3462 = vmatprep.subr.bf16.mxu0 %v3461_v2 }
 0x2ea   : > { %3464 = vmatpush3.bf16.msra.mxu0 %v3461_v2 }
 0x2eb   : > { %v1054_v34 = vpop.permute.xlu1 %1053  ;;  %v1077_v39 = vpop.permute.xlu0 %1076  ;;  %3466 = vmatprep.subr.bf16.mxu0 %v3465_v37 }
 0x2ec   : > { %v1097_v1 = vsel %vm869_vm3, %v4195_v29, %v1054_v34 }
 0x2ee   : > { %3468 = vmatpush3.bf16.msra.mxu0 %v3465_v37 }
 0x2ef   : > { %v1075_v53 = vpop.permute.xlu1 %1074  ;;  %v1052_v55 = vpop.permute.xlu0 %1051  ;;  %3470 = vmatprep.subr.bf16.mxu0 %v3469_v41 }
 0x2f0   : > { %v1104_v59 = vsel %vm1100_vm5, %v1095_v46, %v1075_v53  ;;  %v1096_v51 = vsel %vm869_vm3, %v4168_v7, %v1052_v55  ;;  %v1736_v46 = vld [vmem:[%s4842_s11 + $0x20] sm:$0xff]  ;;  %v1737_v53 = vld [vmem:[%s4842_s11 + $0x28] sm:$0xff] }
 0x2f1   : > { %3205 = vmatmul.mubr.msk.f32.gmra.mrb[10].mxu0 %vm1115_vm6, %v1104_v59  ;;  %v1105_v63 = vsel %vm1100_vm5, %v1096_v51, %v1077_v39  ;;  %v1732_v39 = vld [vmem:[%s4842_s11] sm:$0xff]  ;;  %v3485_v55 = vpack.c.bf16 %v1737_v53, %v1736_v46  ;;  %v1739_v59 = vld [vmem:[%s4842_s11 + $0x38] sm:$0xff] }
 0x2f2   : > { %3207 = vmatprep.mubr.msk.f32.mxu0 %vm1115_vm6, %v1105_v63  ;;  %3472 = vmatpush3.bf16.msra.mxu0 %v3469_v41  ;;  %v1740_v63 = vld [vmem:[%s4842_s11 + $0x40] sm:$0xff] }
 0x2f3   : > { %3474 = vmatprep.subr.bf16.mxu0 %v3473_v56 }
 0x2f6   : > { %3476 = vmatpush3.bf16.msra.mxu0 %v3473_v56  ;;  %v1738_v56 = vld [vmem:[%s4842_s11 + $0x30] sm:$0xff] }
 0x2f7   : > { %v1058_v49 = vpop.permute.xlu1 %1057  ;;  %v1081_v9 = vpop.permute.xlu0 %1080  ;;  %v3489_v51 = vpack.c.bf16 %v1739_v59, %v1738_v56 }
 0x2f8   : > { %v1099_v13 = vsel %vm869_vm3, %v4206_v43, %v1058_v49  ;;  %v1741_v49 = vld [vmem:[%s4842_s11 + $0x48] sm:$0xff] }
 0x2f9   : > { %v1108_v29 = vsel %vm1100_vm5, %v1099_v13, %v4259_v18 }
 0x2fb   : > { %v1079_v5 = vpop.permute.xlu1 %1078  ;;  %v1056_v8 = vpop.permute.xlu0 %1055 }
 0x2fc   : > { %v1106_v12 = vsel %vm1100_vm5, %v1097_v1, %v1079_v5  ;;  %v1098_v7 = vsel %vm869_vm3, %v4189_v32, %v1056_v8 }
 0x2fd   : > { %3208 = vmatmul.mubr.msk.f32.gmra.mrb[12].mxu0 %vm1115_vm6, %v1106_v12  ;;  %v1107_v14 = vsel %vm1100_vm5, %v1098_v7, %v1081_v9  ;;  %v3493_v9 = vpack.c.bf16 %v1741_v49, %v1740_v63 }
 0x2fe   : > { %3210 = vmatprep.mubr.msk.f32.mxu0 %vm1115_vm6, %v1107_v14 }
 0x2ff   : > { %v1531_v16 = vpop.permute.xlu1 %1530  ;;  %v1553_v17 = vpop.permute.xlu0 %1552 }
 0x300   : > { %v1574_v43 = vsel %vm869_vm3, %v1499_v57, %v1531_v16  ;;  %v1742_v16 = vld [vmem:[%s4842_s11 + $0x50] sm:$0xff] }
 0x301   : > { %3211 = vmatmul.mubr.msk.f32.gmra.mrb[14].mxu0 %vm1115_vm6, %v1108_v29 }
 0x303   : > { %v1535_v19 = vpop.permute.xlu1 %1534  ;;  %v1529_v21 = vpop.permute.xlu0 %1528 }
 0x304   : > { %v1573_v32 = vsel %vm869_vm3, 0.0, %v1529_v21  ;;  %v1576_v48 = vsel %vm869_vm3, %v4228_v62, %v1535_v19  ;;  %v2946_v21 = vld [vmem:[%s4841_s10] ss:$0 sm:$0xff] }
 0x305   : > { %v1581_v22 = vsel %vm1100_vm5, %v1573_v32, %v1553_v17  ;;  %v1743_v17 = vld [vmem:[%s4842_s11 + $0x58] sm:$0xff] }
 0x306   : > { %3261 = vmatprep.mubr.msk.f32.mxu0 %vm1115_vm6, %v1581_v22  ;;  %v3497_v19 = vpack.c.bf16 %v1743_v17, %v1742_v16 }
 0x307   : > { %v1555_v23 = vpop.permute.xlu1 %1554  ;;  %v1557_v20 = vpop.permute.xlu0 %1556 }
 0x308   : > { %v1582_v24 = vsel %vm1100_vm5, %v1574_v43, %v1555_v23 }
 0x309   : > { %3262 = vmatmul.mubr.msk.f32.vlgmr.msra.gmra.mrb[16].mxu0 %vm1115_vm6, %v1582_v24 }
 0x30b   : > { %v1539_v27 = vpop.permute.xlu1 %1538  ;;  %v1533_v6 = vpop.permute.xlu0 %1532 }
 0x30c   : > { %v1575_v30 = vsel %vm869_vm3, %v4212_v47, %v1533_v6  ;;  %v1578_v47 = vsel %vm869_vm3, %v4240_v4, %v1539_v27 }
 0x30d   : > { %v1583_v31 = vsel %vm1100_vm5, %v1575_v30, %v1557_v20 }
 0x30e   : > { %3264 = vmatprep.mubr.msk.f32.mxu0 %vm1115_vm6, %v1583_v31 }
 0x30f   : > { %v1559_v10 = vpop.permute.xlu1 %1558  ;;  %v1561_v57 = vpop.permute.xlu0 %1560 }
 0x310   : > { %v1584_v33 = vsel %vm1100_vm5, %v1576_v48, %v1559_v10 }
 0x311   : > { %3265 = vmatmul.mubr.msk.f32.gmra.mrb[18].mxu0 %vm1115_vm6, %v1584_v33 }
 0x313   : > { %v1563_v36 = vpop.permute.xlu1 %1562  ;;  %v1537_v15 = vpop.permute.xlu0 %1536 }
 0x314   : > { %v1577_v2 = vsel %vm869_vm3, %v4221_v58, %v1537_v15  ;;  %v1586_v35 = vsel %vm1100_vm5, %v1578_v47, %v1563_v36 }
 0x315   : > { %v1585_v3 = vsel %vm1100_vm5, %v1577_v2, %v1561_v57 }
 0x316   : > { %3267 = vmatprep.mubr.msk.f32.mxu0 %vm1115_vm6, %v1585_v3 }
 0x317   : > { %v1543_v62 = vpop.permute.xlu1 %1542  ;;  %3268 = vmatmul.mubr.msk.f32.gmra.mrb[20].mxu0 %vm1115_vm6, %v1586_v35  ;;  %v1541_v37 = vpop.permute.xlu0 %1540 }
 0x318   : > { %v1580_v38 = vsel %vm869_vm3, %v4246_v11, %v1543_v62  ;;  %v1579_v28 = vsel %vm869_vm3, %v4234_v0, %v1541_v37  ;;  %v1733_v11 = vld [vmem:[%s4842_s11 + $0x8] sm:$0xff]  ;;  %v1734_v0 = vld [vmem:[%s4842_s11 + $0x10] sm:$0xff] }
 0x319   : > { %v1588_v4 = vsel %vm1100_vm5, %v1580_v38, %v4259_v18  ;;  %v3477_v41 = vpack.c.bf16 %v1733_v11, %v1732_v39  ;;  %v3481_v45 = vpack.c.bf16 %v1735_v44, %v1734_v0 }
 0x31b   : > { %v1565_v58 = vpop.permute.xlu0 %1564  ;;  %3478 = vmatprep.subr.bf16.mxu1 %v3477_v41 }
 0x31c   : > { %v1587_v34 = vsel %vm1100_vm5, %v1579_v28, %v1565_v58  ;;  %3480 = vmatpush3.bf16.msra.mxu1 %v3477_v41 }
 0x31d   : > { %3270 = vmatprep.mubr.msk.f32.mxu0 %vm1115_vm6, %v1587_v34  ;;  %3482 = vmatprep.subr.bf16.mxu1 %v3481_v45 }
 0x31e   : > { %3271 = vmatmul.mubr.msk.f32.gmra.mrb[22].mxu0 %vm1115_vm6, %v1588_v4 }
 0x320   : > { %3484 = vmatpush3.bf16.msra.mxu1 %v3481_v45 }
 0x321   : > { %3486 = vmatprep.subr.bf16.mxu1 %v3485_v55 }
 0x324   : > { %3488 = vmatpush3.bf16.msra.mxu1 %v3485_v55 }
 0x325   : > { %3490 = vmatprep.subr.bf16.mxu1 %v3489_v51 }
 0x328   : > { %3492 = vmatpush3.bf16.msra.mxu1 %v3489_v51 }
 0x329   : > { %3494 = vmatprep.subr.bf16.mxu1 %v3493_v9 }
 0x32c   : > { %3496 = vmatpush3.bf16.msra.mxu1 %v3493_v9 }
 0x32d   : > { %3498 = vmatprep.subr.bf16.mxu1 %v3497_v19 }
 0x330   : > { %3500 = vmatpush3.bf16.msra.mxu1 %v3497_v19 }
 0x3b4   : > { %v4385_v1 = vpop.f32.mrb[8].mxu0 }
 0x3b5   : > { %v4387_v5 = vpop.f32.mrb[9].mxu0 }
 0x3c4   : > { %v4389_v8 = vpop.f32.mrb[10].mxu0 }
 0x3c5   : > { %v4391_v12 = vpop.f32.mrb[11].mxu0 }
 0x3d0   : > { %v4393_v7 = vpop.f32.mrb[12].mxu0 }
 0x3d1   : > { %v4395_v13 = vpop.f32.mrb[13].mxu0 }
 0x3d4   : > { %v4397_v14 = vpop.f32.mrb[14].mxu0 }
 0x3d5   : > { %v4405_v29 = vpop.f32.mrb[15].mxu0 }
 0x3dc   : > { %v3263_v32 = vpop.f32.mrb[16].mxu0 }
 0x3dd   : > { %v1691_v22 = vadd.f32 %v3263_v32, %v2946_v21  ;;  %v1685_v43 = vpop.f32.mrb[17].mxu0 }
 0x3de   : > { %v1686_v23 = vadd.f32 %v2946_v21, %v1685_v43 }
 0x3df   : > { %v1725_v20 = vmax.f32 %v1691_v22, 0.0 }
 0x3e0   : > { %v1724_v24 = vmax.f32 %v1686_v23, 0.0 }
 0x3e1   : > { %1803 = vrot.lane.b32.xlu0 %v1725_v20, %s3684_s2  ;;  %v1778_v27 = vrot.slane %v1725_v20, 1  ;;  %v1754_v16 = vrot.slane %v1725_v20, 7 }
 0x3e2   : > { %1801 = vrot.lane.b32.xlu1 %v1724_v24, %s3684_s2  ;;  %v1777_v6 = vrot.slane %v1724_v24, 1  ;;  %v1753_v49 = vrot.slane %v1724_v24, 7 }
 0x3e3   : > { %v1794_v30 = vsel %vm828_vm1, %v1778_v27, 0.0  ;;  %v1770_v32 = vsel %vm803_vm2, 0.0, %v1754_v16 }
 0x3e4   : > { %v3266_v31 = vpop.f32.mrb[18].mxu0  ;;  %v1793_v48 = vsel %vm828_vm1, %v1777_v6, 0.0  ;;  %v1769_v19 = vsel %vm803_vm2, 0.0, %v1753_v49 }
 0x3e5   : > { %v1701_v10 = vadd.f32 %v3266_v31, %v2946_v21  ;;  %1835 = vrot.lane.b32.xlu0 %v1794_v30, %s4883_s23  ;;  %v1695_v57 = vpop.f32.mrb[19].mxu0 }
 0x3e6   : > { %v1696_v33 = vadd.f32 %v2946_v21, %v1695_v57  ;;  %1833 = vrot.lane.b32.xlu1 %v1793_v48, %s4883_s23 }
 0x3e7   : > { %v1727_v36 = vmax.f32 %v1701_v10, 0.0 }
 0x3e8   : > { %v1726_v15 = vmax.f32 %v1696_v33, 0.0 }
 0x3e9   : > { %1807 = vrot.lane.b32.xlu0 %v1727_v36, %s3684_s2  ;;  %v1780_v2 = vrot.slane %v1727_v36, 1  ;;  %v1756_v30 = vrot.slane %v1727_v36, 7 }
 0x3ea   : > { %1805 = vrot.lane.b32.xlu1 %v1726_v15, %s3684_s2  ;;  %v3269_v47 = vpop.f32.mrb[20].mxu0  ;;  %v1779_v3 = vrot.slane %v1726_v15, 1  ;;  %v1755_v24 = vrot.slane %v1726_v15, 7 }
 0x3eb   : > { %v1711_v35 = vadd.f32 %v3269_v47, %v2946_v21  ;;  %v1705_v62 = vpop.f32.mrb[21].mxu0  ;;  %v1796_v37 = vsel %vm828_vm1, %v1780_v2, 0.0  ;;  %v1772_v57 = vsel %vm803_vm2, 0.0, %v1756_v30 }
 0x3ec   : > { %v1706_v38 = vadd.f32 %v2946_v21, %v1705_v62  ;;  %v1795_v28 = vsel %vm828_vm1, %v1779_v3, 0.0  ;;  %v1771_v48 = vsel %vm803_vm2, 0.0, %v1755_v24 }
 0x3ed   : > { %v1729_v58 = vmax.f32 %v1711_v35, 0.0  ;;  %1839 = vrot.lane.b32.xlu0 %v1796_v37, %s4883_s23 }
 0x3ee   : > { %v1728_v34 = vmax.f32 %v1706_v38, 0.0  ;;  %1837 = vrot.lane.b32.xlu1 %v1795_v28, %s4883_s23 }
 0x3ef   : > { %v1782_v4 = vrot.slane %v1729_v58, 1  ;;  %v1758_v62 = vrot.slane %v1729_v58, 7 }
 0x3f0   : > { %v1781_v11 = vrot.slane %v1728_v34, 1  ;;  %v1757_v15 = vrot.slane %v1728_v34, 7 }
 0x3f1   : > { %1811 = vrot.lane.b32.xlu0 %v1729_v58, %s3684_s2  ;;  %v3272_v39 = vpop.f32.mrb[22].mxu0  ;;  %v1798_v46 = vsel %vm828_vm1, %v1782_v4, 0.0  ;;  %v1774_v4 = vsel %vm803_vm2, 0.0, %v1758_v62  ;;  %v2019_v62 = vld [vmem:[%s4844_s13 + $0x18] sm:$0xff] }
 0x3f2   : > { %v1721_v0 = vadd.f32 %v3272_v39, %v2946_v21  ;;  %1809 = vrot.lane.b32.xlu1 %v1728_v34, %s3684_s2  ;;  %v1715_v41 = vpop.f32.mrb[23].mxu0  ;;  %v1797_v55 = vsel %vm828_vm1, %v1781_v11, 0.0  ;;  %v1773_v38 = vsel %vm803_vm2, 0.0, %v1757_v15  ;;  %v2017_v15 = vld [vmem:[%s4844_s13 + $0x8] sm:$0xff] }
 0x3f3   : > { %v1716_v44 = vadd.f32 %v2946_v21, %v1715_v41 }
 0x3f4   : > { %v4424_v45 = vmax.f32 %v1721_v0, 0.0 }
 0x3f5   : > { %v1730_v53 = vmax.f32 %v1716_v44, 0.0  ;;  %1843 = vrot.lane.b32.xlu0 %v1798_v46, %s4883_s23 }
 0x3f6   : > { %1841 = vrot.lane.b32.xlu1 %v1797_v55, %s4883_s23  ;;  %v1784_v56 = vrot.slane %v4424_v45, 1  ;;  %v1760_v46 = vrot.slane %v4424_v45, 7 }
 0x3f7   : > { %v1783_v59 = vrot.slane %v1730_v53, 1  ;;  %v1759_v34 = vrot.slane %v1730_v53, 7 }
 0x3f8   : > { %v1800_v51 = vsel %vm828_vm1, %v1784_v56, 0.0 }
 0x3f9   : > { %1815 = vrot.lane.b32.xlu0 %v4424_v45, %s3684_s2  ;;  %v1799_v63 = vsel %vm828_vm1, %v1783_v59, 0.0  ;;  %v1775_v56 = vsel %vm803_vm2, 0.0, %v1759_v34  ;;  %v3685_v45 = vmov -inf  }
 0x3fa   : > { %1813 = vrot.lane.b32.xlu1 %v1730_v53, %s3684_s2 }
 0x3fd   : > { %1847 = vrot.lane.b32.xlu0 %v1800_v51, %s4883_s23  ;;  %v1776_v51 = vsel %vm803_vm2, 0.0, %v1760_v46 }
 0x3fe   : > { %1845 = vrot.lane.b32.xlu1 %v1799_v63, %s4883_s23 }
 0x453   : > { %v1804_v9 = vpop.permute.xlu0 %1803 }
 0x454   : > { %v1802_v17 = vpop.permute.xlu1 %1801  ;;  %v1858_v23 = vsel %vm869_vm3, %v1770_v32, %v1804_v9 }
 0x455   : > { %v1857_v22 = vsel %vm869_vm3, %v1769_v19, %v1802_v17  ;;  %v2242_v17 = vrot.slane %v3685_v45, 7  ;;  %v2273_v19 = vrot.slane %v3685_v45, 1 }
 0x457   : > { %v1836_v21 = vpop.permute.xlu0 %1835  ;;  %v4475_v32 = vsel %vm828_vm1, %v2273_v19, -inf }
 0x458   : > { %v1834_v43 = vpop.permute.xlu1 %1833  ;;  %v1866_v6 = vsel %vm1100_vm5, %v1858_v23, %v1836_v21  ;;  %v4472_v21 = vsel %vm803_vm2, -inf, %v2242_v17 }
 0x459   : > { %v1865_v27 = vsel %vm1100_vm5, %v1857_v22, %v1834_v43  ;;  %v3607_v22 = vld [vmem:[%s3850_s0] sm:$0xff]  ;;  %v2297_v23 = vmax.f32 %v4472_v21, %v4475_v32 }
 0x45a   : > { %3297 = vmatprep.mubr.msk.f32.mxu1 %vm1115_vm6, %v1865_v27  ;;  %v2243_v43 = vrot.slane %v3607_v22, 7 }
 0x45b   : > { %3298 = vmatmul.mubr.msk.f32.vlgmr.msra.gmra.mrb[16].mxu1 %vm1115_vm6, %v1866_v6  ;;  %v1808_v20 = vpop.permute.xlu0 %1807  ;;  %v2274_v6 = vrot.slane %v3607_v22, 1 }
 0x45c   : > { %v1806_v31 = vpop.permute.xlu1 %1805  ;;  %v1860_v47 = vsel %vm869_vm3, %v1772_v57, %v1808_v20  ;;  %v2259_v27 = vsel %vm803_vm2, -inf, %v2243_v43  ;;  %v2359_v57 = vld [vmem:[%s4846_s15 + $0x8] sm:$0xff]  ;;  %v3610_v43 = vld [vmem:[%s3850_s0 + $0x18] sm:$0xff] }
 0x45d   : > { %v1859_v33 = vsel %vm869_vm3, %v1771_v48, %v1806_v31  ;;  %v2308_v24 = vmax.f32 %v2297_v23, %v2259_v27  ;;  %v2266_v20 = vmax.f32 %v2259_v27, %v3607_v22  ;;  %v2290_v30 = vsel %vm828_vm1, %v2274_v6, -inf  ;;  %v3611_v6 = vld [vmem:[%s3850_s0 + $0x20] sm:$0xff] }
 0x45e   : > { %v2246_v23 = vrot.slane %v3610_v43, 7 }
 0x45f   : > { %v1840_v10 = vpop.permute.xlu0 %1839  ;;  %v2316_v31 = vmax.f32 %v2308_v24, %v3607_v22  ;;  %v2298_v48 = vmax.f32 %v2266_v20, %v2290_v30  ;;  %v2247_v24 = vrot.slane %v3611_v6, 7 }
 0x460   : > { %v1838_v2 = vpop.permute.xlu1 %1837  ;;  %v1868_v35 = vsel %vm1100_vm5, %v1860_v47, %v1840_v10  ;;  %v2358_v10 = vld [vmem:[%s4846_s15] sm:$0xff]  ;;  %v2262_v20 = vsel %vm803_vm2, -inf, %v2246_v23 }
 0x461   : > { %v1867_v3 = vsel %vm1100_vm5, %v1859_v33, %v1838_v2  ;;  %v2016_v33 = vld [vmem:[%s4844_s13] sm:$0xff]  ;;  %v3608_v2 = vld [vmem:[%s3850_s0 + $0x8] sm:$0xff] }
 0x462   : > { %3300 = vmatprep.mubr.msk.f32.mxu1 %vm1115_vm6, %v1867_v3  ;;  %v2244_v47 = vrot.slane %v3608_v2, 7  ;;  %v2327_v3 = vmax.f32 %v2316_v31, %v2290_v30  ;;  %v2277_v30 = vrot.slane %v3610_v43, 1 }
 0x463   : > { %3301 = vmatmul.mubr.msk.f32.gmra.mrb[18].mxu1 %vm1115_vm6, %v1868_v35  ;;  %v1812_v36 = vpop.permute.xlu0 %1811  ;;  %v3525_v35 = vpack.c.bf16 %v2359_v57, %v2358_v10  ;;  %v2263_v10 = vsel %vm803_vm2, -inf, %v2247_v24  ;;  %v2278_v57 = vrot.slane %v3611_v6, 1 }
 0x464   : > { %v1810_v37 = vpop.permute.xlu1 %1809  ;;  %v1862_v0 = vsel %vm869_vm3, %v1774_v4, %v1812_v36  ;;  %v2018_v36 = vld [vmem:[%s4844_s13 + $0x10] sm:$0xff]  ;;  %v2275_v4 = vrot.slane %v3608_v2, 1 }
 0x465   : > { %v1861_v39 = vsel %vm869_vm3, %v1773_v38, %v1810_v37  ;;  %v3501_v37 = vpack.c.bf16 %v2017_v15, %v2016_v33  ;;  %v3505_v38 = vpack.c.bf16 %v2019_v62, %v2018_v36  ;;  %3526 = vmatprep.subr.bf16.mxu1 %v3525_v35  ;;  %v2293_v33 = vsel %vm828_vm1, %v2277_v30, -inf }
 0x466   : > { %3528 = vmatpush3.bf16.msra.mxu1 %v3525_v35  ;;  %v2294_v62 = vsel %vm828_vm1, %v2278_v57, -inf }
 0x467   : > { %v1844_v28 = vpop.permute.xlu0 %1843  ;;  %3502 = vmatprep.subr.bf16.mxu0 %v3501_v37 }
 0x468   : > { %v1842_v11 = vpop.permute.xlu1 %1841  ;;  %v1870_v44 = vsel %vm1100_vm5, %v1862_v0, %v1844_v28  ;;  %v2260_v28 = vsel %vm803_vm2, -inf, %v2244_v47  ;;  %v2020_v0 = vld [vmem:[%s4844_s13 + $0x20] sm:$0xff]  ;;  %3504 = vmatpush3.bf16.msra.mxu0 %v3501_v37  ;;  %v2270_v47 = vmax.f32 %v2263_v10, %v3611_v6 }
 0x469   : > { %v1869_v41 = vsel %vm1100_vm5, %v1861_v39, %v1842_v11  ;;  %v2309_v39 = vmax.f32 %v2298_v48, %v2260_v28  ;;  %v2335_v11 = vmax.f32 %v2327_v3, %v2260_v28  ;;  %3506 = vmatprep.subr.bf16.mxu0 %v3505_v38  ;;  %v2267_v17 = vmax.f32 %v2260_v28, %v3608_v2  ;;  %v3612_v3 = vld [vmem:[%s3850_s0 + $0x28] sm:$0xff] }
 0x46a   : > { %3303 = vmatprep.mubr.msk.f32.mxu1 %vm1115_vm6, %v1869_v41  ;;  %v2021_v41 = vld [vmem:[%s4844_s13 + $0x28] sm:$0xff]  ;;  %v2269_v48 = vmax.f32 %v2262_v20, %v3610_v43  ;;  %v2248_v35 = vrot.slane %v3612_v3, 7 }
 0x46b   : > { %3304 = vmatmul.mubr.msk.f32.gmra.mrb[20].mxu1 %vm1115_vm6, %v1870_v44  ;;  %v1816_v58 = vpop.permute.xlu0 %1815  ;;  %v3609_v44 = vld [vmem:[%s3850_s0 + $0x10] sm:$0xff]  ;;  %v2343_v46 = vmax.f32 %v2335_v11, %v3608_v2 }
 0x46c   : > { %v1814_v55 = vpop.permute.xlu1 %1813  ;;  %v1864_v9 = vsel %vm869_vm3, %v1776_v51, %v1816_v58  ;;  %v2245_v34 = vrot.slane %v3609_v44, 7  ;;  %v2317_v58 = vmax.f32 %v2309_v39, %v3608_v2  ;;  %3508 = vmatpush3.bf16.msra.mxu0 %v3505_v38  ;;  %v2301_v15 = vmax.f32 %v2269_v48, %v2293_v33 }
 0x46d   : > { %v1863_v63 = vsel %vm869_vm3, %v1775_v56, %v1814_v55  ;;  %v2291_v55 = vsel %vm828_vm1, %v2275_v4, -inf  ;;  %v3509_v56 = vpack.c.bf16 %v2021_v41, %v2020_v0  ;;  %v2302_v38 = vmax.f32 %v2270_v47, %v2294_v62  ;;  %v3613_v41 = vld [vmem:[%s3850_s0 + $0x30] sm:$0xff] }
 0x46e   : > { %v2350_v51 = vmax.f32 %v2343_v46, %v2291_v55  ;;  %v2299_v19 = vmax.f32 %v2267_v17, %v2291_v55  ;;  %v2264_v28 = vsel %vm803_vm2, -inf, %v2248_v35  ;;  %v2279_v4 = vrot.slane %v3612_v3, 1 }
 0x46f   : > { %v1848_v59 = vpop.permute.xlu0 %1847  ;;  %3510 = vmatprep.subr.bf16.mxu0 %v3509_v56  ;;  %v2312_v11 = vmax.f32 %v2301_v15, %v2263_v10  ;;  %v2271_v0 = vmax.f32 %v2264_v28, %v3612_v3  ;;  %v2280_v17 = vrot.slane %v3613_v41, 1 }
 0x470   : > { %v1846_v49 = vpop.permute.xlu1 %1845  ;;  %v1872_v53 = vsel %vm1100_vm5, %v1864_v9, %v1848_v59  ;;  %v2328_v59 = vmax.f32 %v2317_v58, %v2291_v55  ;;  %3512 = vmatpush3.bf16.msra.mxu0 %v3509_v56  ;;  %v3614_v58 = vld [vmem:[%s3850_s0 + $0x38] sm:$0xff]  ;;  %v2295_v56 = vsel %vm828_vm1, %v2279_v4, -inf }
 0x471   : > { %v1871_v16 = vsel %vm1100_vm5, %v1863_v63, %v1846_v49  ;;  %v2276_v63 = vrot.slane %v3609_v44, 1  ;;  %v2261_v49 = vsel %vm803_vm2, -inf, %v2245_v34  ;;  %v2249_v34 = vrot.slane %v3613_v41, 7 }
 0x472   : > { %3306 = vmatprep.mubr.msk.f32.mxu1 %vm1115_vm6, %v1871_v16  ;;  %v2336_v9 = vmax.f32 %v2328_v59, %v2261_v49  ;;  %v2268_v22 = vmax.f32 %v2261_v49, %v3609_v44  ;;  %v2310_v27 = vmax.f32 %v2299_v19, %v2261_v49  ;;  %v2305_v46 = vrot.slane %v3614_v58, 7 }
 0x473   : > { %3307 = vmatmul.mubr.msk.f32.gmra.mrb[22].mxu1 %vm1115_vm6, %v1872_v53  ;;  %v2292_v53 = vsel %vm828_vm1, %v2276_v63, -inf  ;;  %v2313_v59 = vmax.f32 %v2302_v38, %v2264_v28  ;;  %v2303_v63 = vmax.f32 %v2271_v0, %v2295_v56  ;;  %v2265_v49 = vsel %vm803_vm2, -inf, %v2249_v34 }
 0x474   : > { %3349 = vmatprep.mubr.msk.f32.mxu1 %vm618_vm0, %v2350_v51  ;;  %v2344_v16 = vmax.f32 %v2336_v9, %v3609_v44  ;;  %v2300_v31 = vmax.f32 %v2268_v22, %v2292_v53  ;;  %v2318_v36 = vmax.f32 %v2310_v27, %v3609_v44  ;;  %v2320_v44 = vmax.f32 %v2312_v11, %v3611_v6 }
 0x475   : > { %v2314_v22 = vmax.f32 %v2303_v63, %v2265_v49  ;;  %v2296_v24 = vsel %vm828_vm1, %v2280_v17, -inf  ;;  %v2307_v47 = vsel %vm803_vm2, -inf, %v2305_v46 }
 0x476   : > { %v2351_v45 = vmax.f32 %v2344_v16, %v2292_v53  ;;  %v2311_v2 = vmax.f32 %v2300_v31, %v2262_v20  ;;  %v2329_v39 = vmax.f32 %v2318_v36, %v2292_v53  ;;  %v2321_v16 = vmax.f32 %v2313_v59, %v3612_v3  ;;  %v2026_v59 = vld [vmem:[%s4844_s13 + $0x50] sm:$0xff] }
 0x477   : > { %v2331_v19 = vmax.f32 %v2320_v44, %v2294_v62  ;;  %v2322_v57 = vmax.f32 %v2314_v22, %v3613_v41 }
 0x478   : > { %3350 = vmatmul.mubr.msk.f32.vlgmr.msra.gmra.mrb[24].mxu1 %vm618_vm0, %v2351_v45  ;;  %v2319_v37 = vmax.f32 %v2311_v2, %v3610_v43  ;;  %v2337_v51 = vmax.f32 %v2329_v39, %v2262_v20  ;;  %v2272_v45 = vmax.f32 %v2265_v49, %v3613_v41  ;;  %v2332_v27 = vmax.f32 %v2321_v16, %v2295_v56  ;;  %v2022_v2 = vld [vmem:[%s4844_s13 + $0x30] sm:$0xff]  ;;  %v2024_v39 = vld [vmem:[%s4844_s13 + $0x40] sm:$0xff] }
 0x479   : > { %v2339_v31 = vmax.f32 %v2331_v19, %v2264_v28 }
 0x47a   : > { %v2330_v55 = vmax.f32 %v2319_v37, %v2293_v33  ;;  %v2345_v53 = vmax.f32 %v2337_v51, %v3610_v43  ;;  %v2304_v48 = vmax.f32 %v2272_v45, %v2296_v24  ;;  %v2340_v43 = vmax.f32 %v2332_v27, %v2265_v49  ;;  %v2027_v51 = vld [vmem:[%s4844_s13 + $0x58] sm:$0xff] }
 0x47b   : > { %v2347_v35 = vmax.f32 %v2339_v31, %v3612_v3  ;;  %v2025_v3 = vld [vmem:[%s4844_s13 + $0x48] sm:$0xff]  ;;  %v3521_v44 = vpack.c.bf16 %v2027_v51, %v2026_v59 }
 0x47c   : > { %v2338_v9 = vmax.f32 %v2330_v55, %v2263_v10  ;;  %v2352_v30 = vmax.f32 %v2345_v53, %v2293_v33  ;;  %v2023_v10 = vld [vmem:[%s4844_s13 + $0x38] sm:$0xff]  ;;  %v2333_v33 = vmax.f32 %v2322_v57, %v2296_v24  ;;  %v2315_v15 = vmax.f32 %v2304_v48, %v2307_v47 }
 0x47d   : > { %v2348_v36 = vmax.f32 %v2340_v43, %v3613_v41  ;;  %v2354_v37 = vmax.f32 %v2347_v35, %v2295_v56  ;;  %v3517_v0 = vpack.c.bf16 %v2025_v3, %v2024_v39  ;;  %v2955_v56 = vld [vmem:[%s4843_s12] ss:$0 sm:$0xff] }
 0x47e   : > { %v2346_v23 = vmax.f32 %v2338_v9, %v3611_v6  ;;  %3352 = vmatprep.mubr.msk.f32.mxu1 %vm618_vm0, %v2352_v30  ;;  %v3513_v6 = vpack.c.bf16 %v2023_v10, %v2022_v2  ;;  %v2323_v38 = vmax.f32 %v2315_v15, %v3614_v58  ;;  %v2341_v28 = vmax.f32 %v2333_v33, %v2307_v47 }
 0x47f   : > { %v2355_v4 = vmax.f32 %v2348_v36, %v2296_v24 }
 0x480   : > { %v2353_v20 = vmax.f32 %v2346_v23, %v2294_v62  ;;  %v2324_v62 = vrot.slane %v3614_v58, 1  ;;  %3514 = vmatprep.subr.bf16.mxu0 %v3513_v6  ;;  %v2349_v34 = vmax.f32 %v2341_v28, %v3614_v58 }
 0x481   : > { %3516 = vmatpush3.bf16.msra.mxu0 %v3513_v6  ;;  %v2928_v6 = vld [vmem:[%s4837_s6] ss:$0 sm:$0xff] }
 0x482   : > { %3353 = vmatmul.mubr.msk.f32.gmra.mrb[26].mxu1 %vm618_vm0, %v2353_v20  ;;  %v2326_v11 = vsel %vm828_vm1, %v2324_v62, -inf  ;;  %3518 = vmatprep.subr.bf16.mxu0 %v3517_v0  ;;  %v1212_v35 = vadd.f32 %v4385_v1, %v2928_v6  ;;  %v1207_v33 = vadd.f32 %v2928_v6, %v4387_v5  ;;  %v1222_v28 = vadd.f32 %v4389_v8, %v2928_v6 }
 0x483   : > { %3355 = vmatprep.mubr.msk.f32.mxu1 %vm618_vm0, %v2354_v37  ;;  %v2334_v41 = vmax.f32 %v2323_v38, %v2326_v11  ;;  %v2356_v46 = vmax.f32 %v2349_v34, %v2326_v11  ;;  %v1217_v37 = vadd.f32 %v2928_v6, %v4391_v12  ;;  %v1227_v38 = vadd.f32 %v2928_v6, %v4395_v13 }
 0x484   : > { %v1246_v36 = vmax.f32 %v1212_v35, 0.0  ;;  %v1245_v62 = vmax.f32 %v1207_v33, 0.0  ;;  %v1237_v5 = vadd.f32 %v2928_v6, %v4405_v29  ;;  %v1248_v39 = vmax.f32 %v1222_v28, 0.0 }
 0x485   : > { %v2342_v55 = vmax.f32 %v2334_v41, %v4472_v21  ;;  %3520 = vmatpush3.bf16.msra.mxu0 %v3517_v0  ;;  %v1247_v1 = vmax.f32 %v1217_v37, 0.0  ;;  %v1232_v3 = vadd.f32 %v4393_v7, %v2928_v6  ;;  %v1242_v11 = vadd.f32 %v4397_v14, %v2928_v6 }
 0x486   : > { %3356 = vmatmul.mubr.msk.f32.gmra.mrb[28].mxu1 %vm618_vm0, %v2355_v4  ;;  %3522 = vmatprep.subr.bf16.mxu0 %v3521_v44  ;;  %v1249_v4 = vmax.f32 %v1227_v38, 0.0  ;;  %v1251_v12 = vmax.f32 %v1237_v5, 0.0 }
 0x487   : > { %3358 = vmatprep.mubr.msk.f32.mxu1 %vm618_vm0, %v2356_v46  ;;  %v2357_v58 = vmax.f32 %v2342_v55, %v4475_v32  ;;  %v1250_v13 = vmax.f32 %v1232_v3, 0.0  ;;  %v1252_v8 = vmax.f32 %v1242_v11, 0.0 }
 0x489   : > { %3524 = vmatpush3.bf16.msra.mxu0 %v3521_v44 }
 0x48a   : > { %3359 = vmatmul.mubr.msk.f32.gmra.mrb[30].mxu1 %vm618_vm0, %v2357_v58  ;;  %3396 = vmatprep.subr.mxu0 %v3682_v54 }
 0x48b   : > { %3393 = vmatprep.mubr.msk.f32.mxu1 %vm3687_vm7, %v3682_v54 }
 0x52e   : > { %v3299_v63 = vpop.f32.mrb[16].mxu1 }
 0x52f   : > { %v1975_v21 = vadd.f32 %v3299_v63, %v2955_v56  ;;  %v1969_v49 = vpop.f32.mrb[17].mxu1 }
 0x530   : > { %v4560_v16 = vadd.f32 %v2955_v56, %v1969_v49 }
 0x531   : > { %v4558_v9 = vmax.f32 %v1975_v21, 0.0 }
 0x532   : > { %v2008_v32 = vmax.f32 %v4560_v16, 0.0 }
 0x533   : > { %2061 = vrot.lane.b32.xlu1 %v4558_v9, %s4883_s23  ;;  %2039 = vrot.lane.b32.xlu0 %v4558_v9, %s3684_s2 }
 0x536   : > { %v3302_v45 = vpop.f32.mrb[18].mxu1 }
 0x537   : > { %v1985_v17 = vadd.f32 %v3302_v45, %v2955_v56  ;;  %2037 = vrot.lane.b32.xlu1 %v2008_v32, %s3684_s2  ;;  %v1979_v53 = vpop.f32.mrb[19].mxu1 }
 0x538   : > { %v1980_v22 = vadd.f32 %v2955_v56, %v1979_v53 }
 0x539   : > { %v4571_v19 = vmax.f32 %v1985_v17, 0.0 }
 0x53a   : > { %v4577_v23 = vmax.f32 %v1980_v22, 0.0 }
 0x53b   : > { %2065 = vrot.lane.b32.xlu1 %v4571_v19, %s4883_s23  ;;  %2043 = vrot.lane.b32.xlu0 %v4571_v19, %s3684_s2 }
 0x53e   : > { %v3305_v27 = vpop.f32.mrb[20].mxu1 }
 0x53f   : > { %v1995_v24 = vadd.f32 %v3305_v27, %v2955_v56  ;;  %2041 = vrot.lane.b32.xlu1 %v4577_v23, %s3684_s2  ;;  %2063 = vrot.lane.b32.xlu0 %v4577_v23, %s4883_s23  ;;  %v1989_v30 = vpop.f32.mrb[21].mxu1 }
 0x540   : > { %v1990_v48 = vadd.f32 %v2955_v56, %v1989_v30 }
 0x541   : > { %v4583_v31 = vmax.f32 %v1995_v24, 0.0 }
 0x542   : > { %v4589_v57 = vmax.f32 %v1990_v48, 0.0 }
 0x543   : > { %2069 = vrot.lane.b32.xlu1 %v4583_v31, %s4883_s23  ;;  %2047 = vrot.lane.b32.xlu0 %v4583_v31, %s3684_s2 }
 0x546   : > { %v3308_v20 = vpop.f32.mrb[22].mxu1 }
 0x547   : > { %2045 = vrot.lane.b32.xlu1 %v4589_v57, %s3684_s2  ;;  %2067 = vrot.lane.b32.xlu0 %v4589_v57, %s4883_s23  ;;  %v1999_v2 = vpop.f32.mrb[23].mxu1  ;;  %v2005_v43 = vadd.f32 %v3308_v20, %v2955_v56 }
 0x548   : > { %v2000_v10 = vadd.f32 %v2955_v56, %v1999_v2  ;;  %v2973_v2 = vld [vmem:[%s4847_s16] ss:$0 sm:$0xff] }
 0x549   : > { %v2015_v15 = vmax.f32 %v2005_v43, 0.0 }
 0x54a   : > { %v4595_v47 = vmax.f32 %v2000_v10, 0.0 }
 0x54b   : > { %v3351_v10 = vpop.f32.mrb[24].mxu1 }
 0x54c   : > { %2049 = vrot.lane.b32.xlu1 %v4595_v47, %s3684_s2  ;;  %2071 = vrot.lane.b32.xlu0 %v4595_v47, %s4883_s23  ;;  %v2457_v43 = vpop.f32.mrb[25].mxu1 }
 0x54d   : > { %v2458_v6 = vadd.f32 %v2973_v2, %v2457_v43 }
 0x54f   : > { %v2496_v33 = vmax.f32 %v2458_v6, 0.0 }
 0x550   : > { %2073 = vrot.lane.b32.xlu1 %v2015_v15, %s4883_s23  ;;  %2051 = vrot.lane.b32.xlu0 %v2015_v15, %s3684_s2 }
 0x554   : > { %2514 = vrot.lane.b32.xlu1 %v1246_v36, %s3684_s2  ;;  %2512 = vrot.lane.b32.xlu0 %v1245_v62, %s3684_s2 }
 0x558   : > { %2520 = vrot.lane.b32.xlu1 %v1249_v4, %s3684_s2  ;;  %2516 = vrot.lane.b32.xlu0 %v1247_v1, %s3684_s2 }
 0x55c   : > { %2524 = vrot.lane.b32.xlu1 %v1251_v12, %s3684_s2  ;;  %2518 = vrot.lane.b32.xlu0 %v1248_v39, %s3684_s2 }
 0x560   : > { %2522 = vrot.lane.b32.xlu0 %v1250_v13, %s3684_s2  ;;  %2576 = vrot.lane.b32.xlu1 %v2496_v33, %s4884_s28  ;;  %v2650_v33 = vld [vmem:[%s4848_s17 + $0x58] sm:$0xff] }
 0x564   : > { %2526 = vrot.lane.b32.xlu0 %v1252_v8, %s3684_s2 }
 0x5a5   : > { %v2062_v29 = vpop.permute.xlu1 %2061  ;;  %v2040_v0 = vpop.permute.xlu0 %2039 }
 0x5a6   : > { %v2083_v14 = vsel %vm869_vm3, %v2008_v32, %v2040_v0  ;;  %v2639_v0 = vld [vmem:[%s4848_s17] sm:$0xff] }
 0x5a9   : > { %v2038_v41 = vpop.permute.xlu1 %2037 }
 0x5aa   : > { %v2082_v34 = vsel %vm869_vm3, 0.0, %v2038_v41  ;;  %v2640_v41 = vld [vmem:[%s4848_s17 + $0x8] sm:$0xff] }
 0x5ab   : > { %v2090_v7 = vsel %vm1100_vm5, %v2082_v34, %v2062_v29  ;;  %v2964_v29 = vld [vmem:[%s4845_s14] ss:$0 sm:$0xff]  ;;  %v3530_v34 = vpack.c.bf16 %v2640_v41, %v2639_v0 }
 0x5ac   : > { %3333 = vmatprep.mubr.msk.f32.mxu0 %vm1115_vm6, %v2090_v7 }
 0x5ad   : > { %v2066_v46 = vpop.permute.xlu1 %2065  ;;  %v2044_v55 = vpop.permute.xlu0 %2043 }
 0x5ae   : > { %v2085_v49 = vsel %vm869_vm3, %v4577_v23, %v2044_v55 }
 0x5b1   : > { %v2042_v56 = vpop.permute.xlu1 %2041  ;;  %v2064_v59 = vpop.permute.xlu0 %2063 }
 0x5b2   : > { %v2084_v51 = vsel %vm869_vm3, %v4558_v9, %v2042_v56  ;;  %v2091_v58 = vsel %vm1100_vm5, %v2083_v14, %v2064_v59  ;;  %v2641_v59 = vld [vmem:[%s4848_s17 + $0x10] sm:$0xff] }
 0x5b3   : > { %3334 = vmatmul.mubr.msk.f32.vlgmr.msra.gmra.mrb[24].mxu0 %vm1115_vm6, %v2091_v58  ;;  %v2092_v44 = vsel %vm1100_vm5, %v2084_v51, %v2066_v46  ;;  %v3686_v46 = vmov 0.0|0.0   ;;  %v2642_v51 = vld [vmem:[%s4848_s17 + $0x18] sm:$0xff] }
 0x5b4   : > { %3336 = vmatprep.mubr.msk.f32.mxu0 %vm1115_vm6, %v2092_v44  ;;  %3529 = vmatprep.subr.bf16.mxu1 %v3686_v46  ;;  %v3533_v44 = vpack.c.bf16 %v2642_v51, %v2641_v59 }
 0x5b5   : > { %v2070_v63 = vpop.permute.xlu1 %2069  ;;  %v2048_v21 = vpop.permute.xlu0 %2047  ;;  %3531 = vmatpush3.bf16.msra.mxu1 %v3530_v34 }
 0x5b6   : > { %v2087_v53 = vsel %vm869_vm3, %v4589_v57, %v2048_v21  ;;  %3532 = vmatprep.subr.bf16.mxu1 %v3686_v46  ;;  %v2643_v21 = vld [vmem:[%s4848_s17 + $0x20] sm:$0xff] }
 0x5b9   : > { %v2046_v16 = vpop.permute.xlu1 %2045  ;;  %v2068_v32 = vpop.permute.xlu0 %2067  ;;  %3534 = vmatpush3.bf16.msra.mxu1 %v3533_v44 }
 0x5ba   : > { %v2086_v45 = vsel %vm869_vm3, %v4571_v19, %v2046_v16  ;;  %v2093_v9 = vsel %vm1100_vm5, %v2085_v49, %v2068_v32  ;;  %3535 = vmatprep.subr.bf16.mxu1 %v3686_v46  ;;  %v2644_v49 = vld [vmem:[%s4848_s17 + $0x28] sm:$0xff] }
 0x5bb   : > { %3337 = vmatmul.mubr.msk.f32.gmra.mrb[26].mxu0 %vm1115_vm6, %v2093_v9  ;;  %v2094_v17 = vsel %vm1100_vm5, %v2086_v45, %v2070_v63  ;;  %v3536_v16 = vpack.c.bf16 %v2644_v49, %v2643_v21 }
 0x5bc   : > { %3339 = vmatprep.mubr.msk.f32.mxu0 %vm1115_vm6, %v2094_v17 }
 0x5bd   : > { %3537 = vmatpush3.bf16.msra.mxu1 %v3536_v16 }
 0x5be   : > { %v2050_v22 = vpop.permute.xlu1 %2049  ;;  %v2072_v27 = vpop.permute.xlu0 %2071  ;;  %3538 = vmatprep.subr.bf16.mxu1 %v3686_v46 }
 0x5bf   : > { %v2095_v23 = vsel %vm1100_vm5, %v2087_v53, %v2072_v27  ;;  %v2088_v19 = vsel %vm869_vm3, %v4583_v31, %v2050_v22  ;;  %v2463_v31 = vadd.f32 %v3351_v10, %v2973_v2  ;;  %v2645_v53 = vld [vmem:[%s4848_s17 + $0x30] sm:$0xff]  ;;  %v2646_v22 = vld [vmem:[%s4848_s17 + $0x38] sm:$0xff] }
 0x5c0   : > { %3340 = vmatmul.mubr.msk.f32.gmra.mrb[28].mxu0 %vm1115_vm6, %v2095_v23  ;;  %v3539_v23 = vpack.c.bf16 %v2646_v22, %v2645_v53 }
 0x5c1   : > { %v2497_v35 = vmax.f32 %v2463_v31, 0.0 }
 0x5c2   : > { %v2074_v24 = vpop.permute.xlu1 %2073  ;;  %v2052_v30 = vpop.permute.xlu0 %2051  ;;  %3540 = vmatpush3.bf16.msra.mxu1 %v3539_v23 }
 0x5c3   : > { %v2096_v48 = vsel %vm1100_vm5, %v2088_v19, %v2074_v24  ;;  %v2089_v20 = vsel %vm869_vm3, %v4595_v47, %v2052_v30  ;;  %2578 = vrot.lane.b32.xlu0 %v2497_v35, %s4884_s28  ;;  %v3354_v47 = vpop.f32.mrb[26].mxu1  ;;  %3541 = vmatprep.subr.bf16.mxu1 %v3686_v46  ;;  %v2649_v35 = vld [vmem:[%s4848_s17 + $0x50] sm:$0xff] }
 0x5c4   : > { %3342 = vmatprep.mubr.msk.f32.mxu0 %vm1115_vm6, %v2096_v48  ;;  %v2097_v57 = vsel %vm1100_vm5, %v2089_v20, %v4259_v18  ;;  %v2473_v15 = vadd.f32 %v3354_v47, %v2973_v2  ;;  %v2467_v36 = vpop.f32.mrb[27].mxu1  ;;  %v2647_v20 = vld [vmem:[%s4848_s17 + $0x40] sm:$0xff] }
 0x5c5   : > { %3343 = vmatmul.mubr.msk.f32.gmra.mrb[30].mxu0 %vm1115_vm6, %v2097_v57  ;;  %v2468_v18 = vadd.f32 %v2973_v2, %v2467_v36  ;;  %v3357_v38 = vpop.f32.mrb[28].mxu1  ;;  %v2648_v57 = vld [vmem:[%s4848_s17 + $0x48] sm:$0xff]  ;;  %v3545_v36 = vpack.c.bf16 %v2650_v33, %v2649_v35 }
 0x5c6   : > { %v2499_v62 = vmax.f32 %v2473_v15, 0.0  ;;  %v2483_v28 = vadd.f32 %v3357_v38, %v2973_v2  ;;  %v2477_v1 = vpop.f32.mrb[29].mxu1  ;;  %v3542_v10 = vpack.c.bf16 %v2648_v57, %v2647_v20  ;;  %v2651_v38 = vld [vmem:[%s4848_s17 + $0x60] sm:$0xff]  ;;  %3398 = vmatprep.mubr.msk.f32.mxu0 %vm3687_vm7, %v3682_v54 }
 0x5c7   : > { %v2498_v37 = vmax.f32 %v2468_v18, 0.0  ;;  %v2478_v4 = vadd.f32 %v2973_v2, %v2477_v1  ;;  %v3360_v3 = vpop.f32.mrb[30].mxu1 }
 0x5c8   : > { %2582 = vrot.lane.b32.xlu0 %v2499_v62, %s4884_s28  ;;  %v2501_v5 = vmax.f32 %v2483_v28, 0.0  ;;  %v4663_v12 = vadd.f32 %v3360_v3, %v2973_v2  ;;  %v2487_v13 = vpop.f32.mrb[31].mxu1  ;;  %3543 = vmatpush3.bf16.msra.mxu1 %v3542_v10  ;;  %v2652_v28 = vld [vmem:[%s4848_s17 + $0x68] sm:$0xff] }
 0x5c9   : > { %2580 = vrot.lane.b32.xlu1 %v2498_v37, %s4884_s28  ;;  %v2500_v39 = vmax.f32 %v2478_v4, 0.0  ;;  %v2488_v11 = vadd.f32 %v2973_v2, %v2487_v13  ;;  %3544 = vmatprep.subr.bf16.mxu1 %v3686_v46  ;;  %v3548_v1 = vpack.c.bf16 %v2652_v28, %v2651_v38  ;;  %v2513_v13 = vpop.permute.xlu0 %2512 }
 0x5ca   : > { %v2503_v4 = vmax.f32 %v4663_v12, 0.0  ;;  %v2726_v12 = vld [vmem:[%s4849_s18] sm:$0xff]  ;;  %v2600_v21 = vsel %vm869_vm3, %v3895_v26, %v2513_v13 }
 0x5cb   : > { %v2502_v8 = vmax.f32 %v2488_v11, 0.0  ;;  %3397 = vmatpush3.msra.mxu0 %v2726_v12  ;;  %v2515_v11 = vpop.permute.xlu1 %2514 }
 0x5cc   : > { %2586 = vrot.lane.b32.xlu0 %v2501_v5, %s4884_s28  ;;  %3546 = vmatpush3.bf16.msra.mxu1 %v3545_v36  ;;  %v2653_v5 = vld [vmem:[%s4848_s17 + $0x70] sm:$0xff] }
 0x5cd   : > { %2584 = vrot.lane.b32.xlu1 %v2500_v39, %s4884_s28  ;;  %3547 = vmatprep.subr.bf16.mxu1 %v3686_v46  ;;  %v2654_v39 = vld [vmem:[%s4848_s17 + $0x78] sm:$0xff] }
 0x5ce   : > { %v3551_v3 = vpack.c.bf16 %v2654_v39, %v2653_v5 }
 0x5d0   : > { %3549 = vmatpush3.bf16.msra.mxu1 %v3548_v1 }
 0x5d1   : > { %2588 = vrot.lane.b32.xlu1 %v2502_v8, %s4884_s28  ;;  %3550 = vmatprep.subr.bf16.mxu1 %v3686_v46  ;;  %v2517_v8 = vpop.permute.xlu0 %2516 }
 0x5d4   : > { %3552 = vmatpush3.bf16.msra.mxu1 %v3551_v3 }
 0x5d5   : > { %v2519_v0 = vpop.permute.xlu0 %2518 }
 0x5d9   : > { %v2523_v34 = vpop.permute.xlu0 %2522 }
 0x5dd   : > { %v2527_v46 = vpop.permute.xlu0 %2526 }
 0x686   : > { %v3335_v7 = vpop.f32.mrb[24].mxu0 }
 0x687   : > { %v2200_v55 = vadd.f32 %v3335_v7, %v2964_v29  ;;  %v2194_v14 = vpop.f32.mrb[25].mxu0 }
 0x688   : > { %v2195_v56 = vadd.f32 %v2964_v29, %v2194_v14  ;;  %v2579_v14 = vpop.permute.xlu0 %2578 }
 0x689   : > { %v2234_v58 = vmax.f32 %v2200_v55, 0.0 }
 0x68a   : > { %v2233_v63 = vmax.f32 %v2195_v56, 0.0 }
 0x68b   : > { %2546 = vrot.lane.b32.xlu1 %v2234_v58, %s4883_s23 }
 0x68c   : > { %2544 = vrot.lane.b32.xlu0 %v2233_v63, %s4883_s23  ;;  %v2583_v59 = vpop.permute.xlu0 %2582  ;;  %v2601_v63 = vsel %vm869_vm3, %v3893_v25, %v2515_v11  ;;  %v2603_v25 = vsel %vm869_vm3, %v3918_v40, %v2519_v0  ;;  %v2605_v40 = vsel %vm869_vm3, %v3950_v50, %v2523_v34 }
 0x68e   : > { %v3338_v32 = vpop.f32.mrb[26].mxu0 }
 0x68f   : > { %v2210_v45 = vadd.f32 %v3338_v32, %v2964_v29  ;;  %v2204_v9 = vpop.f32.mrb[27].mxu0 }
 0x690   : > { %v2205_v17 = vadd.f32 %v2964_v29, %v2204_v9  ;;  %v2587_v54 = vpop.permute.xlu0 %2586 }
 0x691   : > { %v2236_v27 = vmax.f32 %v2210_v45, 0.0 }
 0x692   : > { %v2235_v19 = vmax.f32 %v2205_v17, 0.0  ;;  %v2602_v17 = vsel %vm869_vm3, %v3925_v42, %v2517_v8 }
 0x693   : > { %2550 = vrot.lane.b32.xlu0 %v2236_v27, %s4883_s23  ;;  %v3341_v24 = vpop.f32.mrb[28].mxu0 }
 0x694   : > { %v2220_v30 = vadd.f32 %v3341_v24, %v2964_v29  ;;  %2548 = vrot.lane.b32.xlu1 %v2235_v19, %s4883_s23  ;;  %v2214_v48 = vpop.f32.mrb[29].mxu0 }
 0x695   : > { %v2215_v2 = vadd.f32 %v2964_v29, %v2214_v48 }
 0x696   : > { %v2238_v31 = vmax.f32 %v2220_v30, 0.0 }
 0x697   : > { %v2237_v43 = vmax.f32 %v2215_v2, 0.0 }
 0x698   : > { %2554 = vrot.lane.b32.xlu0 %v2238_v31, %s4883_s23  ;;  %v3344_v6 = vpop.f32.mrb[30].mxu0 }
 0x699   : > { %v2230_v47 = vadd.f32 %v3344_v6, %v2964_v29  ;;  %2552 = vrot.lane.b32.xlu1 %v2237_v43, %s4883_s23  ;;  %v2224_v15 = vpop.f32.mrb[31].mxu0 }
 0x69a   : > { %v2225_v18 = vadd.f32 %v2964_v29, %v2224_v15  ;;  %v2521_v29 = vpop.permute.xlu1 %2520  ;;  %v2607_v15 = vsel %vm869_vm3, %v3977_v60, %v2527_v46 }
 0x69b   : > { %v2240_v62 = vmax.f32 %v2230_v47, 0.0  ;;  %v2604_v42 = vsel %vm869_vm3, %v3957_v52, %v2521_v29 }
 0x69c   : > { %v2239_v37 = vmax.f32 %v2225_v18, 0.0 }
 0x69d   : > { %2558 = vrot.lane.b32.xlu0 %v2240_v62, %s4883_s23 }
 0x69e   : > { %2556 = vrot.lane.b32.xlu1 %v2239_v37, %s4883_s23  ;;  %v2525_v41 = vpop.permute.xlu1 %2524  ;;  %s3688_s23 = smov [#allocation2]  }
 0x69f   : > { %v2606_v6 = vsel %vm869_vm3, %v3980_v61, %v2525_v41  ;;  %s3619_s20 = sshll.u32 %s3688_s23, 4  ;;  %s3620_s20 = int_to_ptr.vmem [resolvable:$false] %s3619_s20 }
 0x6a2   : > { %2590 = vrot.lane.b32.xlu1 %v2503_v4, %s4884_s28  ;;  %v2577_v7 = vpop.permute.xlu1 %2576  ;;  %s593_s28 = sand.u32 1, %s3669_s30  }
 0x6a3   : > { %s2907_s26 = sshll.u32 %s593_s28, 6  ;;  %s4790_s1 = scalar_lea.sflag [#allocation3], %s593_s28 }
 0x6a4   : > { %s595_s29 = scalar_lea.vmem [#allocation2], %s2907_s26  ;;  %s3621_s26 = scalar_lea.vmem %s3620_s20, 2048 }
 0x6a5   : > { %s2841_s2 = sshll.u32 %s595_s29, 4  ;;  %s4788_s2 = int_to_ptr.vmem [resolvable:$true] %s2841_s2 }
 0x6a6   : > { %v2581_v55 = vpop.permute.xlu1 %2580  ;;  %s3615_s24 = scalar_lea.vmem %s4788_s2, 1024  ;;  %p3622_p0 = scmp.lt.s32.totalorder %s4788_s2, %s3620_s20 }
 0x6a7   : > { %p3616_p11 = scmp.ne.s32.totalorder %s4788_s2, %s3615_s24  ;;  %p3623_p1 = scmp.lt.s32.totalorder %s3621_s26, %s3615_s24 }
 0x6a9   : > { %p3617_p12 = pnand %p3616_p11, %p3829_p5  ;;  %p3624_p2 = por %p3623_p1, %p3622_p0 }
 0x6aa   : > { %v2585_v56 = vpop.permute.xlu1 %2584 }
 0x6ab   : > { %p3618_p13 = pneg %p3617_p12 }
 0x6ad   : > { %p3625_p3 = pnand %p3624_p2, %p3618_p13 }
 0x6ae   : > { %v2589_v51 = vpop.permute.xlu1 %2588 }
 0x6fd   : > { %v2547_v58 = vpop.permute.xlu1 %2546 }
 0x6fe   : > { %v2545_v44 = vpop.permute.xlu0 %2544  ;;  %v2609_v49 = vsel %vm1100_vm5, %v2601_v63, %v2547_v58 }
 0x6ff   : > { %v2608_v16 = vsel %vm1100_vm5, %v2600_v21, %v2545_v44  ;;  %v4748_v32 = vsel %vm1115_vm6, %v2609_v49, %v2579_v14 }
 0x700   : > { %v4751_v45 = vsel %vm1115_vm6, %v2608_v16, %v2577_v7  ;;  %v2807_v7 = vlaneseq }
 0x701   : > { %v2624_v26 = vadd.f32 %v4748_v32, %v4751_v45 }
 0x702   : > { %v2808_v46 = vshrl.u32 %v2807_v7, 7 }
 0x705   : > { %v2551_v9 = vpop.permute.xlu0 %2550 }
 0x706   : > { %v2549_v53 = vpop.permute.xlu1 %2548  ;;  %v2611_v22 = vsel %vm1100_vm5, %v2603_v25, %v2551_v9 }
 0x707   : > { %v2610_v27 = vsel %vm1100_vm5, %v2602_v17, %v2549_v53  ;;  %v2619_v24 = vsel %vm1115_vm6, %v2611_v22, %v2583_v59 }
 0x708   : > { %v2618_v23 = vsel %vm1115_vm6, %v2610_v27, %v2581_v55  ;;  %v2809_v55 = vsub.s32 0, %v2808_v46 }
 0x709   : > { %v2625_v19 = vadd.f32 %v2624_v26, %v2618_v23 }
 0x70a   : > { %v2555_v30 = vpop.permute.xlu0 %2554 }
 0x70b   : > { %v2553_v48 = vpop.permute.xlu1 %2552  ;;  %v2626_v20 = vadd.f32 %v2625_v19, %v2619_v24  ;;  %v2613_v57 = vsel %vm1100_vm5, %v2605_v40, %v2555_v30 }
 0x70c   : > { %v2612_v2 = vsel %vm1100_vm5, %v2604_v42, %v2553_v48  ;;  %v2621_v43 = vsel %vm1115_vm6, %v2613_v57, %v2587_v54 }
 0x70d   : > { %v2620_v10 = vsel %vm1115_vm6, %v2612_v2, %v2585_v56 }
 0x70e   : > { %v2627_v31 = vadd.f32 %v2626_v20, %v2620_v10 }
 0x70f   : > { %v2559_v52 = vpop.permute.xlu0 %2558 }
 0x710   : > { %v2557_v35 = vpop.permute.xlu1 %2556  ;;  %v2628_v33 = vadd.f32 %v2627_v31, %v2621_v43  ;;  %v2615_v18 = vsel %vm1100_vm5, %v2607_v15, %v2559_v52 }
 0x711   : > { %v2614_v47 = vsel %vm1100_vm5, %v2606_v6, %v2557_v35 }
 0x712   : > { %v2622_v50 = vsel %vm1115_vm6, %v2614_v47, %v2589_v51 }
 0x713   : > { %v2629_v36 = vadd.f32 %v2628_v33, %v2622_v50 }
 0x714   : > { %v2591_v62 = vpop.permute.xlu1 %2590 }
 0x715   : > { %v2623_v37 = vsel %vm1115_vm6, %v2615_v18, %v2591_v62 }
 0x716   : > { %v2630_v38 = vadd.f32 %v2629_v36, %v2623_v37 }
 0x718   : > { %v2631_v28 = vrot.slane %v2630_v38, 4 }
 0x71a   : > { %v2632_v1 = vadd.f32 %v2631_v28, %v2630_v38 }
 0x71c   : > { %v2633_v61 = vrot.slane %v2632_v1, 2 }
 0x71e   : > { %v2634_v4 = vadd.f32 %v2633_v61, %v2632_v1 }
 0x720   : > { %v2635_v5 = vrot.slane %v2634_v4, 1 }
 0x722   : > { %v2636_v39 = vadd.f32 %v2635_v5, %v2634_v4 }
 0x724   : > { %v2638_v3 = vmul.f32 0.015625, %v2636_v39 }
 0x726   : > { %3394 = vmatmul.mubr.f32.vlgmr.msra.gmra.mrb[32].mxu1 %v2638_v3 }
 0x7f9   : > { %v2721_v12 = vpop.f32.mrb[32].mxu1 }
 0x7fa   : > { %v2725_v13 = vmax.f32 %v2721_v12, 0.0  ;;  %v3395_v60 = vpop.f32.mrb[33].mxu1 }
 0x7fc   : > { %3399 = vmatmul.mubr.msk.f32.vlgmr.msra.gmra.mrb[32].mxu0 %vm2727_vm8, %v2725_v13 }
 0x8cf   : > { %v2797_v11 = vpop.f32.mrb[32].mxu0 }
 0x8d0   : > { %v2801_v8 = vsub.f32 0.0, %v2797_v11  ;;  %v3400_v29 = vpop.f32.mrb[33].mxu0 }
 0x8d2   : > { %v2802_v0 = vmul.f32 1.442695, %v2801_v8 }
 0x8d4   : > { %3603 = vpow2.f32 %v2802_v0 }
 0x8de   : > { %v3604_v41 = vpop.eup %3603 }
 0x8df   : > { %v2804_v34 = vadd.f32 1.0, %v3604_v41 }
 0x8e1   : > { %3605 = vrcp.f32 %v2804_v34 }
 0x8eb   : > { %v3606_v14 = vpop.eup %3605 }
 0x8ec   : > { %v2810_v56 = vrot.slane %v3606_v14, %v2809_v55 }
 0x8ee   : > { %v2811_v59 = vmul.f32 %v2810_v56, %v4751_v45  ;;  %v2812_v51 = vmul.f32 %v2810_v56, %v4748_v32  ;;  %v2813_v54 = vmul.f32 %v2810_v56, %v2618_v23  ;;  %v2814_v58 = vmul.f32 %v2810_v56, %v2619_v24 }
 0x8ef   : > { %v2815_v44 = vmul.f32 %v2810_v56, %v2620_v10  ;;  %v2816_v63 = vmul.f32 %v2810_v56, %v2621_v43  ;;  %v2817_v21 = vmul.f32 %v2810_v56, %v2622_v50  ;;  %v2818_v49 = vmul.f32 %v2810_v56, %v2623_v37 }
 0x8f0   : > { %2819 = vst [vmem:[%s595_s29] sm:$0xff] %v2811_v59  ;;  %2820 = vst [vmem:[%s595_s29 + $0x8] sm:$0xff] %v2812_v51 }
 0x8f1   : > { %2821 = vst [vmem:[%s595_s29 + $0x10] sm:$0xff] %v2813_v54  ;;  %2822 = vst [vmem:[%s595_s29 + $0x18] sm:$0xff] %v2814_v58 }
 0x8f2   : > { %2823 = vst [vmem:[%s595_s29 + $0x20] sm:$0xff] %v2815_v44  ;;  %2824 = vst [vmem:[%s595_s29 + $0x28] sm:$0xff] %v2816_v63 }
 0x8f3   : > { %2825 = vst [vmem:[%s595_s29 + $0x30] sm:$0xff] %v2817_v21  ;;  %2826 = vst [vmem:[%s595_s29 + $0x38] sm:$0xff] %v2818_v49 }
 0x8f4   : > { %3628 = shalt.err (!%p3625_p3)
}
 0x8f5   : > { %s3629_s28 = scalar_lea.hbm %s4786_s22, 1024  ;;  %s3633_s3 = scalar_lea.hbm %s4850_s19, 2048 }
 0x8f6   : > { %p3630_p4 = scmp.ne.s32.totalorder %s4786_s22, %s3629_s28  ;;  %p3634_p9 = scmp.lt.u32.totalorder %s4786_s22, %s4850_s19 }
 0x8f7   : > { %p3635_p10 = scmp.lt.u32.totalorder %s3633_s3, %s3629_s28  ;;  %p3637_p12 = scmp.lt.u32.totalorder %s3629_s28, %s4786_s22 }
 0x8f8   : > { %p3631_p7 = pnand %p3630_p4, %p3829_p5 }
 0x8f9   : > { %p3636_p11 = por %p3635_p10, %p3634_p9 }
 0x8fa   : > { %p3632_p8 = pneg %p3631_p7 }
 0x8fb   : > { %p3638_p13 = por %p3637_p12, %p3636_p11 }
 0x8fd   : > { %p3639_p0 = pnand %p3638_p13, %p3632_p8 }
 0x8ff   : > { %3642 = shalt.err (!%p3639_p0)
}
 0x900   : > { %s3689_s24 = smov 128   ;;  %s3690_s20 = smov 8  }
 0x901   : > { %3553 = dma.vmem_to_hbm [thread:$0]  (%p3829_p5), %s4788_s2, 1024, %s4786_s22, %s4790_s1, %s3689_s24, %s3689_s24, %s3690_s20  }
 0x902 PF: > { %s4886_s26 = sld [smem:[#allocation7_spill]]  ;;  %s4887_s27 = sld [smem:[#allocation5_spill]] }
 0x908   : > { %p3559_p1 = scmp.ge.s32.totalorder %s4886_s26, 2  ;;  %s2856_s21 = sand.u32 1, %s4887_s27  }
 0x909   : > { %s2857_s28 = scalar_lea.sflag [#allocation3], %s2856_s21 }
 0x90a   : > { %p3556_p2 = pnand %p3559_p1, %p3833_p6 }
 0x90c   : > { %3660 = dma.done.wait (!%p3556_p2), %s2857_s28, 1024  }
 0x90d   : > { %3662 = vsyncadd (!%p3556_p2), %s2857_s28, 4294966272  ;;  %s4889_s21 = sld [smem:[#allocation8_spill]]  ;;  %s4890_s3 = sld [smem:[#allocation6_spill]] }
 0x90e   : > { %s4891_s20 = sld [smem:[#allocation9_spill]]  ;;  %s4892_s0 = smov %s3669_s30 }
 0x913   : > { %p29_p3 = scmp.ge.s32.totalorder %s4889_s21, 4   ;;  %s4893_s30 = smov %s4890_s3 }
 0x915   :  { %31 = sbr.rel (!%p29_p3) target bundleno = 8 (0x8), region = 131 }
 0x91c   :  { %2862 = vsyncpa [#allocation3], 1 }
 0x91d   :  { %2864 = vsyncpa [#allocation3 + $0x1], 1 }

</bundles_post_ra>
